<compile_context>
chip_gen: v7x
topology: tpu7x:2x2x1
jax: 0.10.0
libtpu: 0.0.40
codegen_flags: <defaults>
</compile_context>

<pallas_src>
import functools
import math

import jax
import jax.numpy as jnp
from jax.experimental import pallas as pl
from jax.experimental.pallas import tpu as pltpu


# ----------------------------- kernel parameters -----------------------------

def kernel_mus(n_kernels: int):
    l_mu = [1.0]
    if n_kernels == 1:
        return l_mu
    bin_size = 2.0 / (n_kernels - 1)
    l_mu.append(1.0 - bin_size / 2.0)
    for i in range(1, n_kernels - 1):
        l_mu.append(l_mu[i] - bin_size)
    return l_mu


def kernel_sigmas(n_kernels: int):
    l_sigma = [0.0001]
    if n_kernels == 1:
        return l_sigma
    bin_size = 2.0 / (n_kernels - 1)
    l_sigma += [0.5 * bin_size] * (n_kernels - 1)
    return l_sigma


def _round_up(x: int, m: int) -> int:
    return ((x + m - 1) // m) * m


# --------------------------------- kernel ------------------------------------

def _kernel_pooling_kernel(*refs, n_kernels, mus, neg_inv_2sig2, derived_const,
                           rf_coef, s_clamp_lo, d_len, td, stream_qd):
    """Grid step = (one batch block) x (one lane-dense document tile)."""
    if stream_qd:
        (cmm_ref, qd_ref, qm_ref, inv_dlen_ref, scaler_ref,
         log_ref, norm_ref, acc_ref) = refs
    else:
        (cmm_ref, qm_ref, dm_ref, inv_dlen_ref, scaler_ref,
         log_ref, norm_ref, acc_ref) = refs

    d_idx = pl.program_id(1)
    last_d = pl.num_programs(1) - 1

    @pl.when(d_idx == 0)
    def _init():
        acc_ref[...] = jnp.zeros_like(acc_ref)

    # Lane-validity mask for the (possibly ragged) last document tile.  It also
    # sanitizes any out-of-bounds garbage read by the edge block so no NaN/Inf
    # can leak through the masking multiplies.
    lane = jax.lax.broadcasted_iota(jnp.int32, (1, 1, td), dimension=2)
    valid = (d_idx * td + lane) < d_len                       # (1, 1, td)

    s = jnp.where(valid, cmm_ref[...].astype(jnp.float32), 0.0)   # (Bt, Q, td)
    if stream_qd:
        w = jnp.where(valid, qd_ref[...].astype(jnp.float32), 0.0)
    else:
        dm = jnp.where(valid, dm_ref[...].astype(jnp.float32), 0.0)  # (Bt,1,td)
        w = qm_ref[...] * dm                                         # (Bt,Q,td)

    # Shared factor for the exp-sharing recurrence (see wrapper), once per tile.
    rf = None
    if any(c is not None for c in derived_const):
        rf = jnp.exp(jnp.maximum(s, s_clamp_lo) * rf_coef)

    g_prev = None
    for k in range(n_kernels):
        if derived_const[k] is None:
            diff = s - mus[k]
            g = jnp.exp(diff * diff * neg_inv_2sig2[k])          # direct exp
        else:
            # g_k = g_{k-1} * exp(-2*c*bin*s) * C_k  (same sigma, mu - bin)
            g = (g_prev * rf) * derived_const[k]
        g_prev = g
        acc_ref[k] += jnp.sum(g * w, axis=-1, keepdims=True)     # (Bt, Q, 1)

    @pl.when(d_idx == last_d)
    def _finalize():
        scaler = scaler_ref[0]
        qm_s = qm_ref[...] * scaler                              # (Bt, Q, 1)
        inv_d = inv_dlen_ref[...]                                # (Bt, 1, 1)
        log_cols, norm_cols = [], []
        for k in range(n_kernels):
            rsd = acc_ref[k]                                     # (Bt, Q, 1)
            lg = jnp.log2(jnp.maximum(rsd, 1e-10))
            log_cols.append(jnp.sum(lg * qm_s, axis=1, keepdims=True))
            norm_cols.append(jnp.sum(rsd * qm_s, axis=1, keepdims=True) * inv_d)
        log_ref[0] = jnp.concatenate(log_cols, axis=-1)          # (Bt, 1, K)
        norm_ref[0] = jnp.concatenate(norm_cols, axis=-1)        # (Bt, 1, K)


# --------------------------------- wrapper -----------------------------------

@functools.partial(jax.jit,
                   static_argnames=("n_kernels", "block_d", "block_b",
                                    "use_exp_recurrence"))
def kernel_pooling(cross_match_matrix, query_mask, document_mask, nn_scaler,
                   query_by_doc_mask=None, *, n_kernels, block_d=512,
                   block_b=None, use_exp_recurrence=True):
    """Returns (log_result_k, normed_result_k), each of shape (B, n_kernels).

    If `query_by_doc_mask` is None it is reconstructed in-kernel as
    query_mask[:, :, None] * document_mask[:, None, :] (the standard usage),
    which removes an entire (B, Q, D)-sized HBM stream.
    """
    f32 = jnp.float32
    B, Q, D = cross_match_matrix.shape
    K = int(n_kernels)
    assert K >= 1
    assert query_mask.shape == (B, Q)
    assert document_mask.shape == (B, D)

    stream_qd = query_by_doc_mask is not None
    if stream_qd:
        assert query_by_doc_mask.shape == (B, Q, D)
        if query_by_doc_mask.dtype == jnp.bool_:
            query_by_doc_mask = query_by_doc_mask.astype(f32)
    if cross_match_matrix.dtype == jnp.bool_:
        cross_match_matrix = cross_match_matrix.astype(f32)

    mus = tuple(float(m) for m in kernel_mus(K))
    sigmas = tuple(float(s) for s in kernel_sigmas(K))
    neg_inv_2sig2 = tuple(-1.0 / (2.0 * s * s) for s in sigmas)

    # exp-sharing constants: for even k >= 2 (same sigma as k-1, mu one bin
    # lower):  g_k(s) = g_{k-1}(s) * exp(-2*c*bin*s) * exp(2*c*bin*mu_{k-1}
    # - c*bin^2), c = 1/(2 sigma^2).  Only used when the constants stay in f32
    # range; otherwise those kernels fall back to a direct exp.
    derived_const = [None] * K
    rf_coef = 0.0
    s_clamp_lo = 0.0
    if use_exp_recurrence and K >= 3:
        bin_size = 2.0 / (K - 1)
        c = 1.0 / (2.0 * sigmas[1] * sigmas[1])
        rf_coef = -2.0 * c * bin_size
        s_clamp_lo = -80.0 / abs(rf_coef)         # keeps exp(rf_coef*s) finite
        for k in range(2, K, 2):
            log_c = 2.0 * c * bin_size * mus[k - 1] - c * bin_size * bin_size
            if abs(log_c) < 80.0:
                derived_const[k] = math.exp(log_c)
    derived_const = tuple(derived_const)

    # --- tiling ---------------------------------------------------------------
    block_d = max(128, _round_up(int(block_d), 128))
    td = D if D <= block_d else block_d           # full dim or 128-multiple tile
    n_d_tiles = pl.cdiv(D, td)

    itemsize = jnp.dtype(cross_match_matrix.dtype).itemsize
    if block_b is None:
        target = 1 << 20                          # ~1 MiB of cross-match / step
        bt = max(1, target // max(1, Q * td * itemsize))
        if stream_qd:
            bt = max(1, bt // 2)
    else:
        bt = int(block_b)
    Bt = max(1, min(bt, B))
    n_b_blocks = pl.cdiv(B, Bt)
    B_pad = n_b_blocks * Bt

    # --- small auxiliary inputs (the large (B,Q,D) tensors are untouched) -----
    qm3 = query_mask.astype(f32).reshape(B, Q, 1)
    doc_len = jnp.sum(document_mask.astype(f32), axis=1)
    inv_dlen = (1.0 / (doc_len + 1e-4)).astype(f32).reshape(B, 1, 1)
    scaler = jnp.asarray(nn_scaler, f32).reshape(1)

    grid = (n_b_blocks, n_d_tiles)
    cmm_spec = pl.BlockSpec((Bt, Q, td), lambda b, d: (b, 0, d))
    qm_spec = pl.BlockSpec((Bt, Q, 1), lambda b, d: (b, 0, 0))
    inv_spec = pl.BlockSpec((Bt, 1, 1), lambda b, d: (b, 0, 0))
    scaler_spec = pl.BlockSpec(memory_space=pltpu.MemorySpace.SMEM)
    out_spec = pl.BlockSpec((1, Bt, 1, K), lambda b, d: (b, 0, 0, 0))

    if stream_qd:
        qd_spec = pl.BlockSpec((Bt, Q, td), lambda b, d: (b, 0, d))
        in_specs = [cmm_spec, qd_spec, qm_spec, inv_spec, scaler_spec]
        args = (cross_match_matrix, query_by_doc_mask, qm3, inv_dlen, scaler)
        big_bytes = Bt * Q * td * (itemsize +
                                   jnp.dtype(query_by_doc_mask.dtype).itemsize)
    else:
        dm3 = document_mask.astype(f32).reshape(B, 1, D)
        dm_spec = pl.BlockSpec((Bt, 1, td), lambda b, d: (b, 0, d))
        in_specs = [cmm_spec, qm_spec, dm_spec, inv_spec, scaler_spec]
        args = (cross_match_matrix, qm3, dm3, inv_dlen, scaler)
        big_bytes = Bt * Q * td * itemsize + Bt * td * 4

    scratch_bytes = K * Bt * _round_up(Q, 8) * 4
    vmem_limit = int(min(64 << 20,
                         max(32 << 20, 2 * big_bytes + scratch_bytes + (8 << 20))))

    kernel = functools.partial(
        _kernel_pooling_kernel, n_kernels=K, mus=mus,
        neg_inv_2sig2=neg_inv_2sig2, derived_const=derived_const,
        rf_coef=rf_coef, s_clamp_lo=s_clamp_lo, d_len=D, td=td,
        stream_qd=stream_qd)

    log_k, norm_k = pl.pallas_call(
        kernel,
        out_shape=(jax.ShapeDtypeStruct((n_b_blocks, Bt, 1, K), f32),
                   jax.ShapeDtypeStruct((n_b_blocks, Bt, 1, K), f32)),
        grid=grid,
        in_specs=in_specs,
        out_specs=(out_spec, out_spec),
        scratch_shapes=[pltpu.VMEM((K, Bt, Q, 1), f32)],     # rsd accumulator
        compiler_params=pltpu.CompilerParams(
            dimension_semantics=("parallel", "arbitrary"),
            vmem_limit_bytes=vmem_limit),
    )(*args)

    log_k = log_k.reshape(B_pad, K)[:B]
    norm_k = norm_k.reshape(B_pad, K)[:B]
    return log_k, norm_k


# ----------------------------------- demo ------------------------------------

if __name__ == "__main__":
    key = jax.random.PRNGKey(0)

    def reference(cmm, qm, dm, qd, nn_scaler, K):
        mu = jnp.asarray(kernel_mus(K), jnp.float32).reshape(1, 1, 1, K)
        sigma = jnp.asarray(kernel_sigmas(K), jnp.float32).reshape(1, 1, 1, K)
        km = jnp.exp(-((cmm[..., None] - mu) ** 2) / (2.0 * sigma ** 2))
        km = km * qd[..., None]
        rsd = jnp.sum(km, axis=2)
        log_r = jnp.log2(jnp.maximum(rsd, 1e-10)) * nn_scaler * qm[..., None]
        dlen = jnp.sum(dm, axis=1)
        norm_r = rsd / (dlen[:, None, None] + 1e-4) * nn_scaler * qm[..., None]
        return jnp.sum(log_r, axis=1), jnp.sum(norm_r, axis=1)

    nn_scaler = jnp.full((1,), 0.01, jnp.float32)

    # Run 1: fast path (query-by-doc mask reconstructed in-kernel).
    B, Q, D, K = 2, 8, 128, 11
    k1, k2, k3, k4, k5, k6 = jax.random.split(key, 6)
    cmm = jax.random.uniform(k1, (B, Q, D), jnp.float32, -1.0, 1.0)
    qm = (jax.random.uniform(k2, (B, Q)) < 0.8).astype(jnp.float32)
    dm = (jax.random.uniform(k3, (B, D)) < 0.9).astype(jnp.float32)
    qd = qm[:, :, None] * dm[:, None, :]

    log_k, norm_k = kernel_pooling(cmm, qm, dm, nn_scaler, n_kernels=K)
    log_k, norm_k = jax.block_until_ready((log_k, norm_k))
    ref_log, ref_norm = reference(cmm, qm, dm, qd, nn_scaler, K)
    assert log_k.shape == (B, K) and norm_k.shape == (B, K)
    assert jnp.allclose(log_k, ref_log, atol=1e-4, rtol=1e-4)
    assert jnp.allclose(norm_k, ref_norm, atol=1e-4, rtol=1e-4)

    # Run 2: explicit query_by_doc_mask stream, ragged doc tiles, Q not a
    # multiple of 8 (exercises the in-kernel lane mask and streamed-qd path).
    B2, Q2, D2 = 2, 5, 300
    cmm2 = jax.random.uniform(k4, (B2, Q2, D2), jnp.float32, -1.0, 1.0)
    qm2 = (jax.random.uniform(k5, (B2, Q2)) < 0.8).astype(jnp.float32)
    dm2 = (jax.random.uniform(k6, (B2, D2)) < 0.9).astype(jnp.float32)
    qd2 = qm2[:, :, None] * dm2[:, None, :]

    log_k2, norm_k2 = kernel_pooling(cmm2, qm2, dm2, nn_scaler,
                                     query_by_doc_mask=qd2, n_kernels=K,
                                     block_d=128)
    log_k2, norm_k2 = jax.block_until_ready((log_k2, norm_k2))
    ref_log2, ref_norm2 = reference(cmm2, qm2, dm2, qd2, nn_scaler, K)
    assert jnp.allclose(log_k2, ref_log2, atol=1e-4, rtol=1e-4)
    assert jnp.allclose(norm_k2, ref_norm2, atol=1e-4, rtol=1e-4)

    print("KERNEL_OK")
</pallas_src>

<mosaic_0001>
module attributes {stable_mosaic.version = 11 : i64} {
  func.func @_kernel_pooling_kernel(%arg0: i32, %arg1: i32, %arg2: memref<2x8x128xf32, #tpu.memory_space<vmem>>, %arg3: memref<2x8x1xf32, #tpu.memory_space<vmem>>, %arg4: memref<2x1x128xf32, #tpu.memory_space<vmem>>, %arg5: memref<2x1x1xf32, #tpu.memory_space<vmem>>, %arg6: memref<1xf32, #tpu.memory_space<smem>>, %arg7: memref<1x2x1x11xf32, #tpu.memory_space<vmem>>, %arg8: memref<1x2x1x11xf32, #tpu.memory_space<vmem>>, %arg9: memref<11x2x8x1xf32, #tpu.memory_space<vmem>>) attributes {dimension_semantics = [#tpu.dimension_semantics<parallel>, #tpu.dimension_semantics<arbitrary>], iteration_bounds = array<i64: 1, 1>, scalar_prefetch = 0 : i64, scratch_operands = 1 : i64, tpu.core_type = #tpu.core_type<tc>, window_params = [{transform_indices = @transform_0, window_bounds = array<i64: 2, 8, 128>}, {transform_indices = @transform_1, window_bounds = array<i64: 2, 8, 1>}, {transform_indices = @transform_2, window_bounds = array<i64: 2, 1, 128>}, {transform_indices = @transform_3, window_bounds = array<i64: 2, 1, 1>}, {transform_indices = @transform_4, window_bounds = array<i64: 1>}, {transform_indices = @transform_5, window_bounds = array<i64: 1, 2, 1, 11>}, {transform_indices = @transform_6, window_bounds = array<i64: 1, 2, 1, 11>}]} {
    %c0_i32 = arith.constant 0 : i32
    %0 = arith.cmpi eq, %arg1, %c0_i32 : i32
    %1 = arith.extui %0 : i1 to i32
    %c0_i32_0 = arith.constant 0 : i32
    %2 = arith.cmpi ne, %1, %c0_i32_0 : i32
    scf.if %2 {
      %cst_121 = arith.constant 0.000000e+00 : f32
      %181 = vector.broadcast %cst_121 : f32 to vector<11x2x8x1xf32>
      %c0_122 = arith.constant 0 : index
      %c0_123 = arith.constant 0 : index
      %c0_124 = arith.constant 0 : index
      %c0_125 = arith.constant 0 : index
      %182 = vector.load %arg9[%c0_122, %c0_123, %c0_124, %c0_125] : memref<11x2x8x1xf32, #tpu.memory_space<vmem>>, vector<11x2x8x1xf32>
      tpu.vector_store %arg9[%c0_122, %c0_123, %c0_124, %c0_125], %181 {strides = array<i32>} : memref<11x2x8x1xf32, #tpu.memory_space<vmem>>, vector<11x2x8x1xf32>,
    } else {
    }
    %3 = tpu.iota {dimensions = array<i32: 2>} : vector<1x1x128xi32>
    %c128_i32 = arith.constant 128 : i32
    %4 = arith.muli %arg1, %c128_i32 : i32
    %5 = vector.broadcast %4 : i32 to vector<1x1x128xi32>
    %6 = arith.addi %5, %3 : vector<1x1x128xi32>
    %c128_i32_1 = arith.constant 128 : i32
    %7 = vector.broadcast %c128_i32_1 : i32 to vector<1x1x128xi32>
    %8 = arith.cmpi slt, %6, %7 : vector<1x1x128xi32>
    %c0 = arith.constant 0 : index
    %c0_2 = arith.constant 0 : index
    %c0_3 = arith.constant 0 : index
    %9 = vector.load %arg2[%c0, %c0_2, %c0_3] : memref<2x8x128xf32, #tpu.memory_space<vmem>>, vector<2x8x128xf32>
    %cst = arith.constant 0.000000e+00 : f32
    %10 = vector.shape_cast %8 : vector<1x1x128xi1> to vector<1x1x128xi1>
    %11 = vector.broadcast %10 : vector<1x1x128xi1> to vector<2x8x128xi1>
    %12 = vector.broadcast %cst : f32 to vector<2x8x128xf32>
    %13 = arith.select %11, %9, %12 : vector<2x8x128xi1>, vector<2x8x128xf32>
    %c0_4 = arith.constant 0 : index
    %c0_5 = arith.constant 0 : index
    %c0_6 = arith.constant 0 : index
    %14 = vector.load %arg4[%c0_4, %c0_5, %c0_6] : memref<2x1x128xf32, #tpu.memory_space<vmem>>, vector<2x1x128xf32>
    %cst_7 = arith.constant 0.000000e+00 : f32
    %15 = vector.shape_cast %8 : vector<1x1x128xi1> to vector<1x1x128xi1>
    %16 = vector.broadcast %15 : vector<1x1x128xi1> to vector<2x1x128xi1>
    %17 = vector.broadcast %cst_7 : f32 to vector<2x1x128xf32>
    %18 = arith.select %16, %14, %17 : vector<2x1x128xi1>, vector<2x1x128xf32>
    %c0_8 = arith.constant 0 : index
    %c0_9 = arith.constant 0 : index
    %c0_10 = arith.constant 0 : index
    %19 = vector.load %arg3[%c0_8, %c0_9, %c0_10] : memref<2x8x1xf32, #tpu.memory_space<vmem>>, vector<2x8x1xf32>
    %20 = vector.broadcast %19 : vector<2x8x1xf32> to vector<2x8x128xf32>
    %21 = vector.broadcast %18 : vector<2x1x128xf32> to vector<2x8x128xf32>
    %22 = arith.mulf %20, %21 : vector<2x8x128xf32>
    %cst_11 = arith.constant -4.000000e+00 : f32
    %23 = vector.broadcast %cst_11 : f32 to vector<2x8x128xf32>
    %24 = arith.maximumf %13, %23 : vector<2x8x128xf32>
    %cst_12 = arith.constant -2.000000e+01 : f32
    %25 = vector.broadcast %cst_12 : f32 to vector<2x8x128xf32>
    %26 = arith.mulf %24, %25 : vector<2x8x128xf32>
    %27 = math.exp %26 : vector<2x8x128xf32>
    %cst_13 = arith.constant 1.000000e+00 : f32
    %28 = vector.broadcast %cst_13 : f32 to vector<2x8x128xf32>
    %29 = arith.subf %13, %28 : vector<2x8x128xf32>
    %30 = arith.mulf %29, %29 : vector<2x8x128xf32>
    %cst_14 = arith.constant -5.000000e+07 : f32
    %31 = vector.broadcast %cst_14 : f32 to vector<2x8x128xf32>
    %32 = arith.mulf %30, %31 : vector<2x8x128xf32>
    %33 = math.exp %32 : vector<2x8x128xf32>
    %c0_15 = arith.constant 0 : index
    %c0_16 = arith.constant 0 : index
    %c0_17 = arith.constant 0 : index
    %c0_18 = arith.constant 0 : index
    %34 = vector.load %arg9[%c0_15, %c0_16, %c0_17, %c0_18] : memref<11x2x8x1xf32, #tpu.memory_space<vmem>>, vector<1x2x8x1xf32>
    %35 = vector.shape_cast %34 : vector<1x2x8x1xf32> to vector<2x8x1xf32>
    %36 = arith.mulf %33, %22 : vector<2x8x128xf32>
    %cst_19 = arith.constant dense<0.000000e+00> : vector<2x8xf32>
    %37 = vector.multi_reduction <add>, %36, %cst_19 [2] : vector<2x8x128xf32> to vector<2x8xf32>
    %38 = vector.shape_cast %37 : vector<2x8xf32> to vector<2x8x1xf32>
    %39 = arith.addf %35, %38 : vector<2x8x1xf32>
    %c0_20 = arith.constant 0 : index
    %c0_21 = arith.constant 0 : index
    %c0_22 = arith.constant 0 : index
    %c0_23 = arith.constant 0 : index
    %40 = vector.load %arg9[%c0_20, %c0_21, %c0_22, %c0_23] : memref<11x2x8x1xf32, #tpu.memory_space<vmem>>, vector<1x2x8x1xf32>
    %41 = vector.shape_cast %40 : vector<1x2x8x1xf32> to vector<2x8x1xf32>
    %42 = vector.shape_cast %39 : vector<2x8x1xf32> to vector<1x2x8x1xf32>
    tpu.vector_store %arg9[%c0_20, %c0_21, %c0_22, %c0_23], %42 {strides = array<i32>} : memref<11x2x8x1xf32, #tpu.memory_space<vmem>>, vector<1x2x8x1xf32>,
    %cst_24 = arith.constant 0.899999976 : f32
    %43 = vector.broadcast %cst_24 : f32 to vector<2x8x128xf32>
    %44 = arith.subf %13, %43 : vector<2x8x128xf32>
    %45 = arith.mulf %44, %44 : vector<2x8x128xf32>
    %cst_25 = arith.constant -5.000000e+01 : f32
    %46 = vector.broadcast %cst_25 : f32 to vector<2x8x128xf32>
    %47 = arith.mulf %45, %46 : vector<2x8x128xf32>
    %48 = math.exp %47 : vector<2x8x128xf32>
    %c1 = arith.constant 1 : index
    %c0_26 = arith.constant 0 : index
    %c0_27 = arith.constant 0 : index
    %c0_28 = arith.constant 0 : index
    %49 = vector.load %arg9[%c1, %c0_26, %c0_27, %c0_28] : memref<11x2x8x1xf32, #tpu.memory_space<vmem>>, vector<1x2x8x1xf32>
    %50 = vector.shape_cast %49 : vector<1x2x8x1xf32> to vector<2x8x1xf32>
    %51 = arith.mulf %48, %22 : vector<2x8x128xf32>
    %cst_29 = arith.constant dense<0.000000e+00> : vector<2x8xf32>
    %52 = vector.multi_reduction <add>, %51, %cst_29 [2] : vector<2x8x128xf32> to vector<2x8xf32>
    %53 = vector.shape_cast %52 : vector<2x8xf32> to vector<2x8x1xf32>
    %54 = arith.addf %50, %53 : vector<2x8x1xf32>
    %c1_30 = arith.constant 1 : index
    %c0_31 = arith.constant 0 : index
    %c0_32 = arith.constant 0 : index
    %c0_33 = arith.constant 0 : index
    %55 = vector.load %arg9[%c1_30, %c0_31, %c0_32, %c0_33] : memref<11x2x8x1xf32, #tpu.memory_space<vmem>>, vector<1x2x8x1xf32>
    %56 = vector.shape_cast %55 : vector<1x2x8x1xf32> to vector<2x8x1xf32>
    %57 = vector.shape_cast %54 : vector<2x8x1xf32> to vector<1x2x8x1xf32>
    tpu.vector_store %arg9[%c1_30, %c0_31, %c0_32, %c0_33], %57 {strides = array<i32>} : memref<11x2x8x1xf32, #tpu.memory_space<vmem>>, vector<1x2x8x1xf32>,
    %58 = arith.mulf %48, %27 : vector<2x8x128xf32>
    %cst_34 = arith.constant 0x4B07975F : f32
    %59 = vector.broadcast %cst_34 : f32 to vector<2x8x128xf32>
    %60 = arith.mulf %58, %59 : vector<2x8x128xf32>
    %c2 = arith.constant 2 : index
    %c0_35 = arith.constant 0 : index
    %c0_36 = arith.constant 0 : index
    %c0_37 = arith.constant 0 : index
    %61 = vector.load %arg9[%c2, %c0_35, %c0_36, %c0_37] : memref<11x2x8x1xf32, #tpu.memory_space<vmem>>, vector<1x2x8x1xf32>
    %62 = vector.shape_cast %61 : vector<1x2x8x1xf32> to vector<2x8x1xf32>
    %63 = arith.mulf %60, %22 : vector<2x8x128xf32>
    %cst_38 = arith.constant dense<0.000000e+00> : vector<2x8xf32>
    %64 = vector.multi_reduction <add>, %63, %cst_38 [2] : vector<2x8x128xf32> to vector<2x8xf32>
    %65 = vector.shape_cast %64 : vector<2x8xf32> to vector<2x8x1xf32>
    %66 = arith.addf %62, %65 : vector<2x8x1xf32>
    %c2_39 = arith.constant 2 : index
    %c0_40 = arith.constant 0 : index
    %c0_41 = arith.constant 0 : index
    %c0_42 = arith.constant 0 : index
    %67 = vector.load %arg9[%c2_39, %c0_40, %c0_41, %c0_42] : memref<11x2x8x1xf32, #tpu.memory_space<vmem>>, vector<1x2x8x1xf32>
    %68 = vector.shape_cast %67 : vector<1x2x8x1xf32> to vector<2x8x1xf32>
    %69 = vector.shape_cast %66 : vector<2x8x1xf32> to vector<1x2x8x1xf32>
    tpu.vector_store %arg9[%c2_39, %c0_40, %c0_41, %c0_42], %69 {strides = array<i32>} : memref<11x2x8x1xf32, #tpu.memory_space<vmem>>, vector<1x2x8x1xf32>,
    %cst_43 = arith.constant 5.000000e-01 : f32
    %70 = vector.broadcast %cst_43 : f32 to vector<2x8x128xf32>
    %71 = arith.subf %13, %70 : vector<2x8x128xf32>
    %72 = arith.mulf %71, %71 : vector<2x8x128xf32>
    %cst_44 = arith.constant -5.000000e+01 : f32
    %73 = vector.broadcast %cst_44 : f32 to vector<2x8x128xf32>
    %74 = arith.mulf %72, %73 : vector<2x8x128xf32>
    %75 = math.exp %74 : vector<2x8x128xf32>
    %c3 = arith.constant 3 : index
    %c0_45 = arith.constant 0 : index
    %c0_46 = arith.constant 0 : index
    %c0_47 = arith.constant 0 : index
    %76 = vector.load %arg9[%c3, %c0_45, %c0_46, %c0_47] : memref<11x2x8x1xf32, #tpu.memory_space<vmem>>, vector<1x2x8x1xf32>
    %77 = vector.shape_cast %76 : vector<1x2x8x1xf32> to vector<2x8x1xf32>
    %78 = arith.mulf %75, %22 : vector<2x8x128xf32>
    %cst_48 = arith.constant dense<0.000000e+00> : vector<2x8xf32>
    %79 = vector.multi_reduction <add>, %78, %cst_48 [2] : vector<2x8x128xf32> to vector<2x8xf32>
    %80 = vector.shape_cast %79 : vector<2x8xf32> to vector<2x8x1xf32>
    %81 = arith.addf %77, %80 : vector<2x8x1xf32>
    %c3_49 = arith.constant 3 : index
    %c0_50 = arith.constant 0 : index
    %c0_51 = arith.constant 0 : index
    %c0_52 = arith.constant 0 : index
    %82 = vector.load %arg9[%c3_49, %c0_50, %c0_51, %c0_52] : memref<11x2x8x1xf32, #tpu.memory_space<vmem>>, vector<1x2x8x1xf32>
    %83 = vector.shape_cast %82 : vector<1x2x8x1xf32> to vector<2x8x1xf32>
    %84 = vector.shape_cast %81 : vector<2x8x1xf32> to vector<1x2x8x1xf32>
    tpu.vector_store %arg9[%c3_49, %c0_50, %c0_51, %c0_52], %84 {strides = array<i32>} : memref<11x2x8x1xf32, #tpu.memory_space<vmem>>, vector<1x2x8x1xf32>,
    %85 = arith.mulf %75, %27 : vector<2x8x128xf32>
    %cst_53 = arith.constant 2980.95801 : f32
    %86 = vector.broadcast %cst_53 : f32 to vector<2x8x128xf32>
    %87 = arith.mulf %85, %86 : vector<2x8x128xf32>
    %c4 = arith.constant 4 : index
    %c0_54 = arith.constant 0 : index
    %c0_55 = arith.constant 0 : index
    %c0_56 = arith.constant 0 : index
    %88 = vector.load %arg9[%c4, %c0_54, %c0_55, %c0_56] : memref<11x2x8x1xf32, #tpu.memory_space<vmem>>, vector<1x2x8x1xf32>
    %89 = vector.shape_cast %88 : vector<1x2x8x1xf32> to vector<2x8x1xf32>
    %90 = arith.mulf %87, %22 : vector<2x8x128xf32>
    %cst_57 = arith.constant dense<0.000000e+00> : vector<2x8xf32>
    %91 = vector.multi_reduction <add>, %90, %cst_57 [2] : vector<2x8x128xf32> to vector<2x8xf32>
    %92 = vector.shape_cast %91 : vector<2x8xf32> to vector<2x8x1xf32>
    %93 = arith.addf %89, %92 : vector<2x8x1xf32>
    %c4_58 = arith.constant 4 : index
    %c0_59 = arith.constant 0 : index
    %c0_60 = arith.constant 0 : index
    %c0_61 = arith.constant 0 : index
    %94 = vector.load %arg9[%c4_58, %c0_59, %c0_60, %c0_61] : memref<11x2x8x1xf32, #tpu.memory_space<vmem>>, vector<1x2x8x1xf32>
    %95 = vector.shape_cast %94 : vector<1x2x8x1xf32> to vector<2x8x1xf32>
    %96 = vector.shape_cast %93 : vector<2x8x1xf32> to vector<1x2x8x1xf32>
    tpu.vector_store %arg9[%c4_58, %c0_59, %c0_60, %c0_61], %96 {strides = array<i32>} : memref<11x2x8x1xf32, #tpu.memory_space<vmem>>, vector<1x2x8x1xf32>,
    %cst_62 = arith.constant 1.000000e-01 : f32
    %97 = vector.broadcast %cst_62 : f32 to vector<2x8x128xf32>
    %98 = arith.subf %13, %97 : vector<2x8x128xf32>
    %99 = arith.mulf %98, %98 : vector<2x8x128xf32>
    %cst_63 = arith.constant -5.000000e+01 : f32
    %100 = vector.broadcast %cst_63 : f32 to vector<2x8x128xf32>
    %101 = arith.mulf %99, %100 : vector<2x8x128xf32>
    %102 = math.exp %101 : vector<2x8x128xf32>
    %c5 = arith.constant 5 : index
    %c0_64 = arith.constant 0 : index
    %c0_65 = arith.constant 0 : index
    %c0_66 = arith.constant 0 : index
    %103 = vector.load %arg9[%c5, %c0_64, %c0_65, %c0_66] : memref<11x2x8x1xf32, #tpu.memory_space<vmem>>, vector<1x2x8x1xf32>
    %104 = vector.shape_cast %103 : vector<1x2x8x1xf32> to vector<2x8x1xf32>
    %105 = arith.mulf %102, %22 : vector<2x8x128xf32>
    %cst_67 = arith.constant dense<0.000000e+00> : vector<2x8xf32>
    %106 = vector.multi_reduction <add>, %105, %cst_67 [2] : vector<2x8x128xf32> to vector<2x8xf32>
    %107 = vector.shape_cast %106 : vector<2x8xf32> to vector<2x8x1xf32>
    %108 = arith.addf %104, %107 : vector<2x8x1xf32>
    %c5_68 = arith.constant 5 : index
    %c0_69 = arith.constant 0 : index
    %c0_70 = arith.constant 0 : index
    %c0_71 = arith.constant 0 : index
    %109 = vector.load %arg9[%c5_68, %c0_69, %c0_70, %c0_71] : memref<11x2x8x1xf32, #tpu.memory_space<vmem>>, vector<1x2x8x1xf32>
    %110 = vector.shape_cast %109 : vector<1x2x8x1xf32> to vector<2x8x1xf32>
    %111 = vector.shape_cast %108 : vector<2x8x1xf32> to vector<1x2x8x1xf32>
    tpu.vector_store %arg9[%c5_68, %c0_69, %c0_70, %c0_71], %111 {strides = array<i32>} : memref<11x2x8x1xf32, #tpu.memory_space<vmem>>, vector<1x2x8x1xf32>,
    %112 = arith.mulf %102, %27 : vector<2x8x128xf32>
    %cst_72 = arith.constant 1.000000e+00 : f32
    %113 = vector.broadcast %cst_72 : f32 to vector<2x8x128xf32>
    %114 = arith.mulf %112, %113 : vector<2x8x128xf32>
    %c6 = arith.constant 6 : index
    %c0_73 = arith.constant 0 : index
    %c0_74 = arith.constant 0 : index
    %c0_75 = arith.constant 0 : index
    %115 = vector.load %arg9[%c6, %c0_73, %c0_74, %c0_75] : memref<11x2x8x1xf32, #tpu.memory_space<vmem>>, vector<1x2x8x1xf32>
    %116 = vector.shape_cast %115 : vector<1x2x8x1xf32> to vector<2x8x1xf32>
    %117 = arith.mulf %114, %22 : vector<2x8x128xf32>
    %cst_76 = arith.constant dense<0.000000e+00> : vector<2x8xf32>
    %118 = vector.multi_reduction <add>, %117, %cst_76 [2] : vector<2x8x128xf32> to vector<2x8xf32>
    %119 = vector.shape_cast %118 : vector<2x8xf32> to vector<2x8x1xf32>
    %120 = arith.addf %116, %119 : vector<2x8x1xf32>
    %c6_77 = arith.constant 6 : index
    %c0_78 = arith.constant 0 : index
    %c0_79 = arith.constant 0 : index
    %c0_80 = arith.constant 0 : index
    %121 = vector.load %arg9[%c6_77, %c0_78, %c0_79, %c0_80] : memref<11x2x8x1xf32, #tpu.memory_space<vmem>>, vector<1x2x8x1xf32>
    %122 = vector.shape_cast %121 : vector<1x2x8x1xf32> to vector<2x8x1xf32>
    %123 = vector.shape_cast %120 : vector<2x8x1xf32> to vector<1x2x8x1xf32>
    tpu.vector_store %arg9[%c6_77, %c0_78, %c0_79, %c0_80], %123 {strides = array<i32>} : memref<11x2x8x1xf32, #tpu.memory_space<vmem>>, vector<1x2x8x1xf32>,
    %cst_81 = arith.constant -3.000000e-01 : f32
    %124 = vector.broadcast %cst_81 : f32 to vector<2x8x128xf32>
    %125 = arith.subf %13, %124 : vector<2x8x128xf32>
    %126 = arith.mulf %125, %125 : vector<2x8x128xf32>
    %cst_82 = arith.constant -5.000000e+01 : f32
    %127 = vector.broadcast %cst_82 : f32 to vector<2x8x128xf32>
    %128 = arith.mulf %126, %127 : vector<2x8x128xf32>
    %129 = math.exp %128 : vector<2x8x128xf32>
    %c7 = arith.constant 7 : index
    %c0_83 = arith.constant 0 : index
    %c0_84 = arith.constant 0 : index
    %c0_85 = arith.constant 0 : index
    %130 = vector.load %arg9[%c7, %c0_83, %c0_84, %c0_85] : memref<11x2x8x1xf32, #tpu.memory_space<vmem>>, vector<1x2x8x1xf32>
    %131 = vector.shape_cast %130 : vector<1x2x8x1xf32> to vector<2x8x1xf32>
    %132 = arith.mulf %129, %22 : vector<2x8x128xf32>
    %cst_86 = arith.constant dense<0.000000e+00> : vector<2x8xf32>
    %133 = vector.multi_reduction <add>, %132, %cst_86 [2] : vector<2x8x128xf32> to vector<2x8xf32>
    %134 = vector.shape_cast %133 : vector<2x8xf32> to vector<2x8x1xf32>
    %135 = arith.addf %131, %134 : vector<2x8x1xf32>
    %c7_87 = arith.constant 7 : index
    %c0_88 = arith.constant 0 : index
    %c0_89 = arith.constant 0 : index
    %c0_90 = arith.constant 0 : index
    %136 = vector.load %arg9[%c7_87, %c0_88, %c0_89, %c0_90] : memref<11x2x8x1xf32, #tpu.memory_space<vmem>>, vector<1x2x8x1xf32>
    %137 = vector.shape_cast %136 : vector<1x2x8x1xf32> to vector<2x8x1xf32>
    %138 = vector.shape_cast %135 : vector<2x8x1xf32> to vector<1x2x8x1xf32>
    tpu.vector_store %arg9[%c7_87, %c0_88, %c0_89, %c0_90], %138 {strides = array<i32>} : memref<11x2x8x1xf32, #tpu.memory_space<vmem>>, vector<1x2x8x1xf32>,
    %139 = arith.mulf %129, %27 : vector<2x8x128xf32>
    %cst_91 = arith.constant 3.35462624E-4 : f32
    %140 = vector.broadcast %cst_91 : f32 to vector<2x8x128xf32>
    %141 = arith.mulf %139, %140 : vector<2x8x128xf32>
    %c8 = arith.constant 8 : index
    %c0_92 = arith.constant 0 : index
    %c0_93 = arith.constant 0 : index
    %c0_94 = arith.constant 0 : index
    %142 = vector.load %arg9[%c8, %c0_92, %c0_93, %c0_94] : memref<11x2x8x1xf32, #tpu.memory_space<vmem>>, vector<1x2x8x1xf32>
    %143 = vector.shape_cast %142 : vector<1x2x8x1xf32> to vector<2x8x1xf32>
    %144 = arith.mulf %141, %22 : vector<2x8x128xf32>
    %cst_95 = arith.constant dense<0.000000e+00> : vector<2x8xf32>
    %145 = vector.multi_reduction <add>, %144, %cst_95 [2] : vector<2x8x128xf32> to vector<2x8xf32>
    %146 = vector.shape_cast %145 : vector<2x8xf32> to vector<2x8x1xf32>
    %147 = arith.addf %143, %146 : vector<2x8x1xf32>
    %c8_96 = arith.constant 8 : index
    %c0_97 = arith.constant 0 : index
    %c0_98 = arith.constant 0 : index
    %c0_99 = arith.constant 0 : index
    %148 = vector.load %arg9[%c8_96, %c0_97, %c0_98, %c0_99] : memref<11x2x8x1xf32, #tpu.memory_space<vmem>>, vector<1x2x8x1xf32>
    %149 = vector.shape_cast %148 : vector<1x2x8x1xf32> to vector<2x8x1xf32>
    %150 = vector.shape_cast %147 : vector<2x8x1xf32> to vector<1x2x8x1xf32>
    tpu.vector_store %arg9[%c8_96, %c0_97, %c0_98, %c0_99], %150 {strides = array<i32>} : memref<11x2x8x1xf32, #tpu.memory_space<vmem>>, vector<1x2x8x1xf32>,
    %cst_100 = arith.constant -0.699999988 : f32
    %151 = vector.broadcast %cst_100 : f32 to vector<2x8x128xf32>
    %152 = arith.subf %13, %151 : vector<2x8x128xf32>
    %153 = arith.mulf %152, %152 : vector<2x8x128xf32>
    %cst_101 = arith.constant -5.000000e+01 : f32
    %154 = vector.broadcast %cst_101 : f32 to vector<2x8x128xf32>
    %155 = arith.mulf %153, %154 : vector<2x8x128xf32>
    %156 = math.exp %155 : vector<2x8x128xf32>
    %c9 = arith.constant 9 : index
    %c0_102 = arith.constant 0 : index
    %c0_103 = arith.constant 0 : index
    %c0_104 = arith.constant 0 : index
    %157 = vector.load %arg9[%c9, %c0_102, %c0_103, %c0_104] : memref<11x2x8x1xf32, #tpu.memory_space<vmem>>, vector<1x2x8x1xf32>
    %158 = vector.shape_cast %157 : vector<1x2x8x1xf32> to vector<2x8x1xf32>
    %159 = arith.mulf %156, %22 : vector<2x8x128xf32>
    %cst_105 = arith.constant dense<0.000000e+00> : vector<2x8xf32>
    %160 = vector.multi_reduction <add>, %159, %cst_105 [2] : vector<2x8x128xf32> to vector<2x8xf32>
    %161 = vector.shape_cast %160 : vector<2x8xf32> to vector<2x8x1xf32>
    %162 = arith.addf %158, %161 : vector<2x8x1xf32>
    %c9_106 = arith.constant 9 : index
    %c0_107 = arith.constant 0 : index
    %c0_108 = arith.constant 0 : index
    %c0_109 = arith.constant 0 : index
    %163 = vector.load %arg9[%c9_106, %c0_107, %c0_108, %c0_109] : memref<11x2x8x1xf32, #tpu.memory_space<vmem>>, vector<1x2x8x1xf32>
    %164 = vector.shape_cast %163 : vector<1x2x8x1xf32> to vector<2x8x1xf32>
    %165 = vector.shape_cast %162 : vector<2x8x1xf32> to vector<1x2x8x1xf32>
    tpu.vector_store %arg9[%c9_106, %c0_107, %c0_108, %c0_109], %165 {strides = array<i32>} : memref<11x2x8x1xf32, #tpu.memory_space<vmem>>, vector<1x2x8x1xf32>,
    %166 = arith.mulf %156, %27 : vector<2x8x128xf32>
    %cst_110 = arith.constant 1.12535176E-7 : f32
    %167 = vector.broadcast %cst_110 : f32 to vector<2x8x128xf32>
    %168 = arith.mulf %166, %167 : vector<2x8x128xf32>
    %c10 = arith.constant 10 : index
    %c0_111 = arith.constant 0 : index
    %c0_112 = arith.constant 0 : index
    %c0_113 = arith.constant 0 : index
    %169 = vector.load %arg9[%c10, %c0_111, %c0_112, %c0_113] : memref<11x2x8x1xf32, #tpu.memory_space<vmem>>, vector<1x2x8x1xf32>
    %170 = vector.shape_cast %169 : vector<1x2x8x1xf32> to vector<2x8x1xf32>
    %171 = arith.mulf %168, %22 : vector<2x8x128xf32>
    %cst_114 = arith.constant dense<0.000000e+00> : vector<2x8xf32>
    %172 = vector.multi_reduction <add>, %171, %cst_114 [2] : vector<2x8x128xf32> to vector<2x8xf32>
    %173 = vector.shape_cast %172 : vector<2x8xf32> to vector<2x8x1xf32>
    %174 = arith.addf %170, %173 : vector<2x8x1xf32>
    %c10_115 = arith.constant 10 : index
    %c0_116 = arith.constant 0 : index
    %c0_117 = arith.constant 0 : index
    %c0_118 = arith.constant 0 : index
    %175 = vector.load %arg9[%c10_115, %c0_116, %c0_117, %c0_118] : memref<11x2x8x1xf32, #tpu.memory_space<vmem>>, vector<1x2x8x1xf32>
    %176 = vector.shape_cast %175 : vector<1x2x8x1xf32> to vector<2x8x1xf32>
    %177 = vector.shape_cast %174 : vector<2x8x1xf32> to vector<1x2x8x1xf32>
    tpu.vector_store %arg9[%c10_115, %c0_116, %c0_117, %c0_118], %177 {strides = array<i32>} : memref<11x2x8x1xf32, #tpu.memory_space<vmem>>, vector<1x2x8x1xf32>,
    %c0_i32_119 = arith.constant 0 : i32
    %178 = arith.cmpi eq, %arg1, %c0_i32_119 : i32
    %179 = arith.extui %178 : i1 to i32
    %c0_i32_120 = arith.constant 0 : i32
    %180 = arith.cmpi ne, %179, %c0_i32_120 : i32
    scf.if %180 {
      %c0_121 = arith.constant 0 : index
      %181 = memref.load %arg6[%c0_121] : memref<1xf32, #tpu.memory_space<smem>>
      %c0_122 = arith.constant 0 : index
      %c0_123 = arith.constant 0 : index
      %c0_124 = arith.constant 0 : index
      %182 = vector.load %arg3[%c0_122, %c0_123, %c0_124] : memref<2x8x1xf32, #tpu.memory_space<vmem>>, vector<2x8x1xf32>
      %183 = vector.broadcast %181 : f32 to vector<2x8x1xf32>
      %184 = arith.mulf %182, %183 : vector<2x8x1xf32>
      %c0_125 = arith.constant 0 : index
      %c0_126 = arith.constant 0 : index
      %c0_127 = arith.constant 0 : index
      %185 = vector.load %arg5[%c0_125, %c0_126, %c0_127] : memref<2x1x1xf32, #tpu.memory_space<vmem>>, vector<2x1x1xf32>
      %c0_128 = arith.constant 0 : index
      %c0_129 = arith.constant 0 : index
      %c0_130 = arith.constant 0 : index
      %c0_131 = arith.constant 0 : index
      %186 = vector.load %arg9[%c0_128, %c0_129, %c0_130, %c0_131] : memref<11x2x8x1xf32, #tpu.memory_space<vmem>>, vector<1x2x8x1xf32>
      %187 = vector.shape_cast %186 : vector<1x2x8x1xf32> to vector<2x8x1xf32>
      %cst_132 = arith.constant 1.000000e-10 : f32
      %188 = vector.broadcast %cst_132 : f32 to vector<2x8x1xf32>
      %189 = arith.maximumf %187, %188 : vector<2x8x1xf32>
      %190 = math.log %189 : vector<2x8x1xf32>
      %cst_133 = arith.constant 2.000000e+00 : f32
      %191 = math.log %cst_133 : f32
      %192 = vector.broadcast %191 : f32 to vector<2x8x1xf32>
      %193 = arith.divf %190, %192 : vector<2x8x1xf32>
      %194 = arith.mulf %193, %184 : vector<2x8x1xf32>
      %cst_134 = arith.constant dense<0.000000e+00> : vector<2x1xf32>
      %195 = vector.multi_reduction <add>, %194, %cst_134 [1] : vector<2x8x1xf32> to vector<2x1xf32>
      %196 = vector.shape_cast %195 : vector<2x1xf32> to vector<2x1x1xf32>
      %197 = arith.mulf %187, %184 : vector<2x8x1xf32>
      %cst_135 = arith.constant dense<0.000000e+00> : vector<2x1xf32>
      %198 = vector.multi_reduction <add>, %197, %cst_135 [1] : vector<2x8x1xf32> to vector<2x1xf32>
      %199 = vector.shape_cast %198 : vector<2x1xf32> to vector<2x1x1xf32>
      %200 = arith.mulf %199, %185 : vector<2x1x1xf32>
      %c1_136 = arith.constant 1 : index
      %c0_137 = arith.constant 0 : index
      %c0_138 = arith.constant 0 : index
      %c0_139 = arith.constant 0 : index
      %201 = vector.load %arg9[%c1_136, %c0_137, %c0_138, %c0_139] : memref<11x2x8x1xf32, #tpu.memory_space<vmem>>, vector<1x2x8x1xf32>
      %202 = vector.shape_cast %201 : vector<1x2x8x1xf32> to vector<2x8x1xf32>
      %cst_140 = arith.constant 1.000000e-10 : f32
      %203 = vector.broadcast %cst_140 : f32 to vector<2x8x1xf32>
      %204 = arith.maximumf %202, %203 : vector<2x8x1xf32>
      %205 = math.log %204 : vector<2x8x1xf32>
      %cst_141 = arith.constant 2.000000e+00 : f32
      %206 = math.log %cst_141 : f32
      %207 = vector.broadcast %206 : f32 to vector<2x8x1xf32>
      %208 = arith.divf %205, %207 : vector<2x8x1xf32>
      %209 = arith.mulf %208, %184 : vector<2x8x1xf32>
      %cst_142 = arith.constant dense<0.000000e+00> : vector<2x1xf32>
      %210 = vector.multi_reduction <add>, %209, %cst_142 [1] : vector<2x8x1xf32> to vector<2x1xf32>
      %211 = vector.shape_cast %210 : vector<2x1xf32> to vector<2x1x1xf32>
      %212 = arith.mulf %202, %184 : vector<2x8x1xf32>
      %cst_143 = arith.constant dense<0.000000e+00> : vector<2x1xf32>
      %213 = vector.multi_reduction <add>, %212, %cst_143 [1] : vector<2x8x1xf32> to vector<2x1xf32>
      %214 = vector.shape_cast %213 : vector<2x1xf32> to vector<2x1x1xf32>
      %215 = arith.mulf %214, %185 : vector<2x1x1xf32>
      %c2_144 = arith.constant 2 : index
      %c0_145 = arith.constant 0 : index
      %c0_146 = arith.constant 0 : index
      %c0_147 = arith.constant 0 : index
      %216 = vector.load %arg9[%c2_144, %c0_145, %c0_146, %c0_147] : memref<11x2x8x1xf32, #tpu.memory_space<vmem>>, vector<1x2x8x1xf32>
      %217 = vector.shape_cast %216 : vector<1x2x8x1xf32> to vector<2x8x1xf32>
      %cst_148 = arith.constant 1.000000e-10 : f32
      %218 = vector.broadcast %cst_148 : f32 to vector<2x8x1xf32>
      %219 = arith.maximumf %217, %218 : vector<2x8x1xf32>
      %220 = math.log %219 : vector<2x8x1xf32>
      %cst_149 = arith.constant 2.000000e+00 : f32
      %221 = math.log %cst_149 : f32
      %222 = vector.broadcast %221 : f32 to vector<2x8x1xf32>
      %223 = arith.divf %220, %222 : vector<2x8x1xf32>
      %224 = arith.mulf %223, %184 : vector<2x8x1xf32>
      %cst_150 = arith.constant dense<0.000000e+00> : vector<2x1xf32>
      %225 = vector.multi_reduction <add>, %224, %cst_150 [1] : vector<2x8x1xf32> to vector<2x1xf32>
      %226 = vector.shape_cast %225 : vector<2x1xf32> to vector<2x1x1xf32>
      %227 = arith.mulf %217, %184 : vector<2x8x1xf32>
      %cst_151 = arith.constant dense<0.000000e+00> : vector<2x1xf32>
      %228 = vector.multi_reduction <add>, %227, %cst_151 [1] : vector<2x8x1xf32> to vector<2x1xf32>
      %229 = vector.shape_cast %228 : vector<2x1xf32> to vector<2x1x1xf32>
      %230 = arith.mulf %229, %185 : vector<2x1x1xf32>
      %c3_152 = arith.constant 3 : index
      %c0_153 = arith.constant 0 : index
      %c0_154 = arith.constant 0 : index
      %c0_155 = arith.constant 0 : index
      %231 = vector.load %arg9[%c3_152, %c0_153, %c0_154, %c0_155] : memref<11x2x8x1xf32, #tpu.memory_space<vmem>>, vector<1x2x8x1xf32>
      %232 = vector.shape_cast %231 : vector<1x2x8x1xf32> to vector<2x8x1xf32>
      %cst_156 = arith.constant 1.000000e-10 : f32
      %233 = vector.broadcast %cst_156 : f32 to vector<2x8x1xf32>
      %234 = arith.maximumf %232, %233 : vector<2x8x1xf32>
      %235 = math.log %234 : vector<2x8x1xf32>
      %cst_157 = arith.constant 2.000000e+00 : f32
      %236 = math.log %cst_157 : f32
      %237 = vector.broadcast %236 : f32 to vector<2x8x1xf32>
      %238 = arith.divf %235, %237 : vector<2x8x1xf32>
      %239 = arith.mulf %238, %184 : vector<2x8x1xf32>
      %cst_158 = arith.constant dense<0.000000e+00> : vector<2x1xf32>
      %240 = vector.multi_reduction <add>, %239, %cst_158 [1] : vector<2x8x1xf32> to vector<2x1xf32>
      %241 = vector.shape_cast %240 : vector<2x1xf32> to vector<2x1x1xf32>
      %242 = arith.mulf %232, %184 : vector<2x8x1xf32>
      %cst_159 = arith.constant dense<0.000000e+00> : vector<2x1xf32>
      %243 = vector.multi_reduction <add>, %242, %cst_159 [1] : vector<2x8x1xf32> to vector<2x1xf32>
      %244 = vector.shape_cast %243 : vector<2x1xf32> to vector<2x1x1xf32>
      %245 = arith.mulf %244, %185 : vector<2x1x1xf32>
      %c4_160 = arith.constant 4 : index
      %c0_161 = arith.constant 0 : index
      %c0_162 = arith.constant 0 : index
      %c0_163 = arith.constant 0 : index
      %246 = vector.load %arg9[%c4_160, %c0_161, %c0_162, %c0_163] : memref<11x2x8x1xf32, #tpu.memory_space<vmem>>, vector<1x2x8x1xf32>
      %247 = vector.shape_cast %246 : vector<1x2x8x1xf32> to vector<2x8x1xf32>
      %cst_164 = arith.constant 1.000000e-10 : f32
      %248 = vector.broadcast %cst_164 : f32 to vector<2x8x1xf32>
      %249 = arith.maximumf %247, %248 : vector<2x8x1xf32>
      %250 = math.log %249 : vector<2x8x1xf32>
      %cst_165 = arith.constant 2.000000e+00 : f32
      %251 = math.log %cst_165 : f32
      %252 = vector.broadcast %251 : f32 to vector<2x8x1xf32>
      %253 = arith.divf %250, %252 : vector<2x8x1xf32>
      %254 = arith.mulf %253, %184 : vector<2x8x1xf32>
      %cst_166 = arith.constant dense<0.000000e+00> : vector<2x1xf32>
      %255 = vector.multi_reduction <add>, %254, %cst_166 [1] : vector<2x8x1xf32> to vector<2x1xf32>
      %256 = vector.shape_cast %255 : vector<2x1xf32> to vector<2x1x1xf32>
      %257 = arith.mulf %247, %184 : vector<2x8x1xf32>
      %cst_167 = arith.constant dense<0.000000e+00> : vector<2x1xf32>
      %258 = vector.multi_reduction <add>, %257, %cst_167 [1] : vector<2x8x1xf32> to vector<2x1xf32>
      %259 = vector.shape_cast %258 : vector<2x1xf32> to vector<2x1x1xf32>
      %260 = arith.mulf %259, %185 : vector<2x1x1xf32>
      %c5_168 = arith.constant 5 : index
      %c0_169 = arith.constant 0 : index
      %c0_170 = arith.constant 0 : index
      %c0_171 = arith.constant 0 : index
      %261 = vector.load %arg9[%c5_168, %c0_169, %c0_170, %c0_171] : memref<11x2x8x1xf32, #tpu.memory_space<vmem>>, vector<1x2x8x1xf32>
      %262 = vector.shape_cast %261 : vector<1x2x8x1xf32> to vector<2x8x1xf32>
      %cst_172 = arith.constant 1.000000e-10 : f32
      %263 = vector.broadcast %cst_172 : f32 to vector<2x8x1xf32>
      %264 = arith.maximumf %262, %263 : vector<2x8x1xf32>
      %265 = math.log %264 : vector<2x8x1xf32>
      %cst_173 = arith.constant 2.000000e+00 : f32
      %266 = math.log %cst_173 : f32
      %267 = vector.broadcast %266 : f32 to vector<2x8x1xf32>
      %268 = arith.divf %265, %267 : vector<2x8x1xf32>
      %269 = arith.mulf %268, %184 : vector<2x8x1xf32>
      %cst_174 = arith.constant dense<0.000000e+00> : vector<2x1xf32>
      %270 = vector.multi_reduction <add>, %269, %cst_174 [1] : vector<2x8x1xf32> to vector<2x1xf32>
      %271 = vector.shape_cast %270 : vector<2x1xf32> to vector<2x1x1xf32>
      %272 = arith.mulf %262, %184 : vector<2x8x1xf32>
      %cst_175 = arith.constant dense<0.000000e+00> : vector<2x1xf32>
      %273 = vector.multi_reduction <add>, %272, %cst_175 [1] : vector<2x8x1xf32> to vector<2x1xf32>
      %274 = vector.shape_cast %273 : vector<2x1xf32> to vector<2x1x1xf32>
      %275 = arith.mulf %274, %185 : vector<2x1x1xf32>
      %c6_176 = arith.constant 6 : index
      %c0_177 = arith.constant 0 : index
      %c0_178 = arith.constant 0 : index
      %c0_179 = arith.constant 0 : index
      %276 = vector.load %arg9[%c6_176, %c0_177, %c0_178, %c0_179] : memref<11x2x8x1xf32, #tpu.memory_space<vmem>>, vector<1x2x8x1xf32>
      %277 = vector.shape_cast %276 : vector<1x2x8x1xf32> to vector<2x8x1xf32>
      %cst_180 = arith.constant 1.000000e-10 : f32
      %278 = vector.broadcast %cst_180 : f32 to vector<2x8x1xf32>
      %279 = arith.maximumf %277, %278 : vector<2x8x1xf32>
      %280 = math.log %279 : vector<2x8x1xf32>
      %cst_181 = arith.constant 2.000000e+00 : f32
      %281 = math.log %cst_181 : f32
      %282 = vector.broadcast %281 : f32 to vector<2x8x1xf32>
      %283 = arith.divf %280, %282 : vector<2x8x1xf32>
      %284 = arith.mulf %283, %184 : vector<2x8x1xf32>
      %cst_182 = arith.constant dense<0.000000e+00> : vector<2x1xf32>
      %285 = vector.multi_reduction <add>, %284, %cst_182 [1] : vector<2x8x1xf32> to vector<2x1xf32>
      %286 = vector.shape_cast %285 : vector<2x1xf32> to vector<2x1x1xf32>
      %287 = arith.mulf %277, %184 : vector<2x8x1xf32>
      %cst_183 = arith.constant dense<0.000000e+00> : vector<2x1xf32>
      %288 = vector.multi_reduction <add>, %287, %cst_183 [1] : vector<2x8x1xf32> to vector<2x1xf32>
      %289 = vector.shape_cast %288 : vector<2x1xf32> to vector<2x1x1xf32>
      %290 = arith.mulf %289, %185 : vector<2x1x1xf32>
      %c7_184 = arith.constant 7 : index
      %c0_185 = arith.constant 0 : index
      %c0_186 = arith.constant 0 : index
      %c0_187 = arith.constant 0 : index
      %291 = vector.load %arg9[%c7_184, %c0_185, %c0_186, %c0_187] : memref<11x2x8x1xf32, #tpu.memory_space<vmem>>, vector<1x2x8x1xf32>
      %292 = vector.shape_cast %291 : vector<1x2x8x1xf32> to vector<2x8x1xf32>
      %cst_188 = arith.constant 1.000000e-10 : f32
      %293 = vector.broadcast %cst_188 : f32 to vector<2x8x1xf32>
      %294 = arith.maximumf %292, %293 : vector<2x8x1xf32>
      %295 = math.log %294 : vector<2x8x1xf32>
      %cst_189 = arith.constant 2.000000e+00 : f32
      %296 = math.log %cst_189 : f32
      %297 = vector.broadcast %296 : f32 to vector<2x8x1xf32>
      %298 = arith.divf %295, %297 : vector<2x8x1xf32>
      %299 = arith.mulf %298, %184 : vector<2x8x1xf32>
      %cst_190 = arith.constant dense<0.000000e+00> : vector<2x1xf32>
      %300 = vector.multi_reduction <add>, %299, %cst_190 [1] : vector<2x8x1xf32> to vector<2x1xf32>
      %301 = vector.shape_cast %300 : vector<2x1xf32> to vector<2x1x1xf32>
      %302 = arith.mulf %292, %184 : vector<2x8x1xf32>
      %cst_191 = arith.constant dense<0.000000e+00> : vector<2x1xf32>
      %303 = vector.multi_reduction <add>, %302, %cst_191 [1] : vector<2x8x1xf32> to vector<2x1xf32>
      %304 = vector.shape_cast %303 : vector<2x1xf32> to vector<2x1x1xf32>
      %305 = arith.mulf %304, %185 : vector<2x1x1xf32>
      %c8_192 = arith.constant 8 : index
      %c0_193 = arith.constant 0 : index
      %c0_194 = arith.constant 0 : index
      %c0_195 = arith.constant 0 : index
      %306 = vector.load %arg9[%c8_192, %c0_193, %c0_194, %c0_195] : memref<11x2x8x1xf32, #tpu.memory_space<vmem>>, vector<1x2x8x1xf32>
      %307 = vector.shape_cast %306 : vector<1x2x8x1xf32> to vector<2x8x1xf32>
      %cst_196 = arith.constant 1.000000e-10 : f32
      %308 = vector.broadcast %cst_196 : f32 to vector<2x8x1xf32>
      %309 = arith.maximumf %307, %308 : vector<2x8x1xf32>
      %310 = math.log %309 : vector<2x8x1xf32>
      %cst_197 = arith.constant 2.000000e+00 : f32
      %311 = math.log %cst_197 : f32
      %312 = vector.broadcast %311 : f32 to vector<2x8x1xf32>
      %313 = arith.divf %310, %312 : vector<2x8x1xf32>
      %314 = arith.mulf %313, %184 : vector<2x8x1xf32>
      %cst_198 = arith.constant dense<0.000000e+00> : vector<2x1xf32>
      %315 = vector.multi_reduction <add>, %314, %cst_198 [1] : vector<2x8x1xf32> to vector<2x1xf32>
      %316 = vector.shape_cast %315 : vector<2x1xf32> to vector<2x1x1xf32>
      %317 = arith.mulf %307, %184 : vector<2x8x1xf32>
      %cst_199 = arith.constant dense<0.000000e+00> : vector<2x1xf32>
      %318 = vector.multi_reduction <add>, %317, %cst_199 [1] : vector<2x8x1xf32> to vector<2x1xf32>
      %319 = vector.shape_cast %318 : vector<2x1xf32> to vector<2x1x1xf32>
      %320 = arith.mulf %319, %185 : vector<2x1x1xf32>
      %c9_200 = arith.constant 9 : index
      %c0_201 = arith.constant 0 : index
      %c0_202 = arith.constant 0 : index
      %c0_203 = arith.constant 0 : index
      %321 = vector.load %arg9[%c9_200, %c0_201, %c0_202, %c0_203] : memref<11x2x8x1xf32, #tpu.memory_space<vmem>>, vector<1x2x8x1xf32>
      %322 = vector.shape_cast %321 : vector<1x2x8x1xf32> to vector<2x8x1xf32>
      %cst_204 = arith.constant 1.000000e-10 : f32
      %323 = vector.broadcast %cst_204 : f32 to vector<2x8x1xf32>
      %324 = arith.maximumf %322, %323 : vector<2x8x1xf32>
      %325 = math.log %324 : vector<2x8x1xf32>
      %cst_205 = arith.constant 2.000000e+00 : f32
      %326 = math.log %cst_205 : f32
      %327 = vector.broadcast %326 : f32 to vector<2x8x1xf32>
      %328 = arith.divf %325, %327 : vector<2x8x1xf32>
      %329 = arith.mulf %328, %184 : vector<2x8x1xf32>
      %cst_206 = arith.constant dense<0.000000e+00> : vector<2x1xf32>
      %330 = vector.multi_reduction <add>, %329, %cst_206 [1] : vector<2x8x1xf32> to vector<2x1xf32>
      %331 = vector.shape_cast %330 : vector<2x1xf32> to vector<2x1x1xf32>
      %332 = arith.mulf %322, %184 : vector<2x8x1xf32>
      %cst_207 = arith.constant dense<0.000000e+00> : vector<2x1xf32>
      %333 = vector.multi_reduction <add>, %332, %cst_207 [1] : vector<2x8x1xf32> to vector<2x1xf32>
      %334 = vector.shape_cast %333 : vector<2x1xf32> to vector<2x1x1xf32>
      %335 = arith.mulf %334, %185 : vector<2x1x1xf32>
      %c10_208 = arith.constant 10 : index
      %c0_209 = arith.constant 0 : index
      %c0_210 = arith.constant 0 : index
      %c0_211 = arith.constant 0 : index
      %336 = vector.load %arg9[%c10_208, %c0_209, %c0_210, %c0_211] : memref<11x2x8x1xf32, #tpu.memory_space<vmem>>, vector<1x2x8x1xf32>
      %337 = vector.shape_cast %336 : vector<1x2x8x1xf32> to vector<2x8x1xf32>
      %cst_212 = arith.constant 1.000000e-10 : f32
      %338 = vector.broadcast %cst_212 : f32 to vector<2x8x1xf32>
      %339 = arith.maximumf %337, %338 : vector<2x8x1xf32>
      %340 = math.log %339 : vector<2x8x1xf32>
      %cst_213 = arith.constant 2.000000e+00 : f32
      %341 = math.log %cst_213 : f32
      %342 = vector.broadcast %341 : f32 to vector<2x8x1xf32>
      %343 = arith.divf %340, %342 : vector<2x8x1xf32>
      %344 = arith.mulf %343, %184 : vector<2x8x1xf32>
      %cst_214 = arith.constant dense<0.000000e+00> : vector<2x1xf32>
      %345 = vector.multi_reduction <add>, %344, %cst_214 [1] : vector<2x8x1xf32> to vector<2x1xf32>
      %346 = vector.shape_cast %345 : vector<2x1xf32> to vector<2x1x1xf32>
      %347 = arith.mulf %337, %184 : vector<2x8x1xf32>
      %cst_215 = arith.constant dense<0.000000e+00> : vector<2x1xf32>
      %348 = vector.multi_reduction <add>, %347, %cst_215 [1] : vector<2x8x1xf32> to vector<2x1xf32>
      %349 = vector.shape_cast %348 : vector<2x1xf32> to vector<2x1x1xf32>
      %350 = arith.mulf %349, %185 : vector<2x1x1xf32>
      %351 = tpu.concatenate %196, %211, %226, %241, %256, %271, %286, %301, %316, %331, %346 in 2 : vector<2x1x1xf32>, vector<2x1x1xf32>, vector<2x1x1xf32>, vector<2x1x1xf32>, vector<2x1x1xf32>, vector<2x1x1xf32>, vector<2x1x1xf32>, vector<2x1x1xf32>, vector<2x1x1xf32>, vector<2x1x1xf32>, vector<2x1x1xf32> -> vector<2x1x11xf32>
      %c0_216 = arith.constant 0 : index
      %c0_217 = arith.constant 0 : index
      %c0_218 = arith.constant 0 : index
      %c0_219 = arith.constant 0 : index
      %352 = vector.load %arg7[%c0_216, %c0_217, %c0_218, %c0_219] : memref<1x2x1x11xf32, #tpu.memory_space<vmem>>, vector<1x2x1x11xf32>
      %353 = vector.shape_cast %352 : vector<1x2x1x11xf32> to vector<2x1x11xf32>
      %354 = vector.shape_cast %351 : vector<2x1x11xf32> to vector<1x2x1x11xf32>
      tpu.vector_store %arg7[%c0_216, %c0_217, %c0_218, %c0_219], %354 {strides = array<i32>} : memref<1x2x1x11xf32, #tpu.memory_space<vmem>>, vector<1x2x1x11xf32>,
      %355 = tpu.concatenate %200, %215, %230, %245, %260, %275, %290, %305, %320, %335, %350 in 2 : vector<2x1x1xf32>, vector<2x1x1xf32>, vector<2x1x1xf32>, vector<2x1x1xf32>, vector<2x1x1xf32>, vector<2x1x1xf32>, vector<2x1x1xf32>, vector<2x1x1xf32>, vector<2x1x1xf32>, vector<2x1x1xf32>, vector<2x1x1xf32> -> vector<2x1x11xf32>
      %c0_220 = arith.constant 0 : index
      %c0_221 = arith.constant 0 : index
      %c0_222 = arith.constant 0 : index
      %c0_223 = arith.constant 0 : index
      %356 = vector.load %arg8[%c0_220, %c0_221, %c0_222, %c0_223] : memref<1x2x1x11xf32, #tpu.memory_space<vmem>>, vector<1x2x1x11xf32>
      %357 = vector.shape_cast %356 : vector<1x2x1x11xf32> to vector<2x1x11xf32>
      %358 = vector.shape_cast %355 : vector<2x1x11xf32> to vector<1x2x1x11xf32>
      tpu.vector_store %arg8[%c0_220, %c0_221, %c0_222, %c0_223], %358 {strides = array<i32>} : memref<1x2x1x11xf32, #tpu.memory_space<vmem>>, vector<1x2x1x11xf32>,
    } else {
    }
    return
  }
  func.func @transform_0(%arg0: i32, %arg1: i32) -> (i32, i32, i32) {
    %c0_i32 = arith.constant 0 : i32
    %c0_i32_0 = arith.constant 0 : i32
    return %arg0, %c0_i32, %arg1 : i32, i32, i32
  }
  func.func @transform_1(%arg0: i32, %arg1: i32) -> (i32, i32, i32) {
    %c0_i32 = arith.constant 0 : i32
    %c0_i32_0 = arith.constant 0 : i32
    %c0_i32_1 = arith.constant 0 : i32
    return %arg0, %c0_i32, %c0_i32_0 : i32, i32, i32
  }
  func.func @transform_2(%arg0: i32, %arg1: i32) -> (i32, i32, i32) {
    %c0_i32 = arith.constant 0 : i32
    %c0_i32_0 = arith.constant 0 : i32
    return %arg0, %c0_i32, %arg1 : i32, i32, i32
  }
  func.func @transform_3(%arg0: i32, %arg1: i32) -> (i32, i32, i32) {
    %c0_i32 = arith.constant 0 : i32
    %c0_i32_0 = arith.constant 0 : i32
    %c0_i32_1 = arith.constant 0 : i32
    return %arg0, %c0_i32, %c0_i32_0 : i32, i32, i32
  }
  func.func @transform_4(%arg0: i32, %arg1: i32) -> i32 {
    %c0_i32 = arith.constant 0 : i32
    %c0_i32_0 = arith.constant 0 : i32
    return %c0_i32 : i32
  }
  func.func @transform_5(%arg0: i32, %arg1: i32) -> (i32, i32, i32, i32) {
    %c0_i32 = arith.constant 0 : i32
    %c0_i32_0 = arith.constant 0 : i32
    %c0_i32_1 = arith.constant 0 : i32
    %c0_i32_2 = arith.constant 0 : i32
    return %arg0, %c0_i32, %c0_i32_0, %c0_i32_1 : i32, i32, i32, i32
  }
  func.func @transform_6(%arg0: i32, %arg1: i32) -> (i32, i32, i32, i32) {
    %c0_i32 = arith.constant 0 : i32
    %c0_i32_0 = arith.constant 0 : i32
    %c0_i32_1 = arith.constant 0 : i32
    %c0_i32_2 = arith.constant 0 : i32
    return %arg0, %c0_i32, %c0_i32_0, %c0_i32_1 : i32, i32, i32, i32
  }
}

</mosaic_0001>

<bundles_post_ra>
// kernel: kernel_pooling.1
= control target key start
LH: loop header
LB: loop body
LE: loop exit
PB: predicated region body
PF: predicated region fallthrough
CT: control target
= control target key end

     0   :  { %13 = vsyncpa [#allocation5], 0  ;;  %v1212_v1 = vmov 0   ;;  %s1745_s0 = inlined_call_operand.vmem [shape: f32[2,8,128], index: 0, kind: input, shape index: {}]   ;;  %s1746_s1 = inlined_call_operand.vmem [shape: f32[2,8,1], index: 1, kind: input, shape index: {}]   ;;  %s1747_s2 = inlined_call_operand.vmem [shape: f32[2,1,128], index: 2, kind: input, shape index: {}]   ;;  %s1748_s3 = inlined_call_operand.vmem [shape: f32[2,1,1], index: 3, kind: input, shape index: {}]   ;;  %s1749_s4 = inlined_call_operand.<no memory space> [shape: f32[1], index: 4, kind: input, shape index: {}]   ;;  %s1750_s5 = inlined_call_operand.hbm [shape: f32[1,2,1,11], index: 5, kind: output, shape index: {0}]   ;;  %s1751_s6 = inlined_call_operand.hbm [shape: f32[1,2,1,11], index: 6, kind: output, shape index: {1}]  }
   0x1   :  { %v1265_v0 = vld [vmem:[%s1746_s1] sm:$0xff]  ;;  %1090 = vset.pattern.permute.xlu0 %v1212_v1  ;;  %v1271_v2 = vld [vmem:[%s1746_s1 + $0x8] sm:$0xff] }
   0x2   :  { %72 = vperm.xlu0 %1090, %v1265_v0  }
   0x3   :  { %14 = vsyncpa [#allocation7], 0  ;;  %v1277_v3 = vld [vmem:[%s1745_s0] sm:$0xff]  ;;  %v59_v7 = vld [vmem:[%s1745_s0 + $0x8] sm:$0xff]  ;;  %vm29_vm0 = vcmask 7168   ;;  %s1214_s11 = smov 1  }
   0x4   :  { %v1065_v4 = vadd.f32 -0.9, %v1277_v3  ;;  %v90_v5 = vmax.f32 %v1277_v3, -4.0  ;;  %v1066_v9 = vadd.f32 -0.9, %v59_v7  ;;  %v91_v12 = vmax.f32 %v59_v7, -4.0 }
   0x5   :  { %v1070_v11 = vadd.f32 -0.1, %v59_v7  ;;  %v1072_v17 = vadd.f32 0.3, %v59_v7  ;;  %v1067_v24 = vadd.f32 -0.5, %v1277_v3  ;;  %v1068_v29 = vadd.f32 -0.5, %v59_v7 }
   0x6   :  { %77 = vperm.xlu0 %1090, %v1271_v2   ;;  %v123_v6 = vmul.f32 %v1065_v4, %v1065_v4  ;;  %v92_v8 = vmul.f32 -20.0, %v90_v5  ;;  %v124_v14 = vmul.f32 %v1066_v9, %v1066_v9  ;;  %v93_v18 = vmul.f32 -20.0, %v91_v12  ;;  %v1061_v41 = vld [vmem:[%s1747_s2] ss:$0 sm:$0xff]  ;;  %v1062_v50 = vld [vmem:[%s1747_s2 + $0x1] ss:$0 sm:$0xff] }
   0x7   :  { %v204_v16 = vmul.f32 %v1070_v11, %v1070_v11  ;;  %v242_v21 = vmul.f32 %v1072_v17, %v1072_v17  ;;  %v1074_v27 = vadd.f32 0.7, %v59_v7  ;;  %v163_v28 = vmul.f32 %v1067_v24, %v1067_v24  ;;  %s1215_s12 = smov 2   ;;  %s1216_s13 = smov 3  }
   0x8   :  { %v125_v10 = vmul.f32 -50.0, %v123_v6  ;;  %v94_v13 = vmul.f32 1.442695, %v92_v8  ;;  %v126_v19 = vmul.f32 -50.0, %v124_v14  ;;  %v96_v22 = vmul.f32 1.442695, %v93_v18 }
   0x9   :  { %v206_v20 = vmul.f32 -50.0, %v204_v16  ;;  %v244_v26 = vmul.f32 -50.0, %v242_v21  ;;  %v282_v31 = vmul.f32 %v1074_v27, %v1074_v27  ;;  %v165_v34 = vmul.f32 -50.0, %v163_v28  ;;  %s1217_s14 = smov 4   ;;  %s1218_s15 = smov 5  }
   0xa   :  { %v127_v15 = vmul.f32 1.442695, %v125_v10  ;;  %1091 = vpow2.f32 %v94_v13  ;;  %v129_v23 = vmul.f32 1.442695, %v126_v19  ;;  %v164_v35 = vmul.f32 %v1068_v29, %v1068_v29  ;;  %s1219_s16 = smov 6   ;;  %s1220_s17 = smov 7  }
   0xb   :  { %v209_v25 = vmul.f32 1.442695, %v206_v20  ;;  %v247_v30 = vmul.f32 1.442695, %v244_v26  ;;  %v284_v36 = vmul.f32 -50.0, %v282_v31  ;;  %v1064_v43 = vadd.f32 -1.0, %v59_v7 }
   0xc   :  { %1093 = vpow2.f32 %v127_v15  ;;  %v167_v38 = vmul.f32 1.442695, %v165_v34  ;;  %v166_v39 = vmul.f32 -50.0, %v164_v35  ;;  %v1069_v58 = vadd.f32 -0.1, %v1277_v3  ;;  %s1221_s18 = smov 8  }
   0xd   :  { %1095 = vpow2.f32 %v96_v22  ;;  %v287_v42 = vmul.f32 1.442695, %v284_v36  ;;  %v101_v51 = vmul.f32 %v1064_v43, %v1064_v43  ;;  %v1071_v6 = vadd.f32 0.3, %v1277_v3  ;;  %s1222_s19 = smov 9   ;;  %s1223_s20 = smov 10  }
   0xe   :  { %1097 = vpow2.f32 %v129_v23  ;;  %v169_v49 = vmul.f32 1.442695, %v166_v39  ;;  %v203_v4 = vmul.f32 %v1069_v58, %v1069_v58  ;;  %v1213_v14 = vmov 0.0   ;;  %s1225_s24 = smov [#allocation6]  }
   0xf   :  { %1099 = vpow2.f32 %v209_v25  ;;  %v103_v60 = vmul.f32 -50000000.0, %v101_v51  ;;  %v241_v13 = vmul.f32 %v1071_v6, %v1071_v6  ;;  %32 = vst.msk [vmem:[#allocation2 + $0x10] sm:$0xff] %vm29_vm0, %v1213_v14  ;;  %30 = vst.msk [vmem:[#allocation2] sm:$0xff] %vm29_vm0, %v1213_v14  ;;  %v1073_v23 = vadd.f32 0.7, %v1277_v3 }
  0x10   :  { %1101 = vpow2.f32 %v247_v30  ;;  %v205_v12 = vmul.f32 -50.0, %v203_v4  ;;  %31 = vst.msk [vmem:[#allocation2 + $0x8] sm:$0xff] %vm29_vm0, %v1213_v14  ;;  %33 = vst.msk [vmem:[#allocation2 + $0x18] sm:$0xff] %vm29_vm0, %v1213_v14  ;;  %vm897_vm1 = vcmask 15360   ;;  %vm900_vm2 = vcmask 23552   ;;  %s1046_s25 = sshll.u32 %s1225_s24, 4  ;;  %s1047_s25 = int_to_ptr.vmem [resolvable:$true] %s1046_s25 }
  0x11   :  { %1103 = vpow2.f32 %v167_v38  ;;  %v106_v5 = vmul.f32 1.442695, %v103_v60  ;;  %34 = vst.msk [vmem:[#allocation2 + $0x20] sm:$0xff] %vm29_vm0, %v1213_v14  ;;  %35 = vst.msk [vmem:[#allocation2 + $0x28] sm:$0xff] %vm29_vm0, %v1213_v14  ;;  %v243_v22 = vmul.f32 -50.0, %v241_v13  ;;  %v281_v29 = vmul.f32 %v1073_v23, %v1073_v23 }
  0x12   :  { %1105 = vpow2.f32 %v287_v42  ;;  %36 = vst.msk [vmem:[#allocation2 + $0x30] sm:$0xff] %vm29_vm0, %v1213_v14  ;;  %37 = vst.msk [vmem:[#allocation2 + $0x38] sm:$0xff] %vm29_vm0, %v1213_v14  ;;  %v207_v20 = vmul.f32 1.442695, %v205_v12  ;;  %vm903_vm3 = vcmask 31744   ;;  %vm906_vm4 = vcmask 39936  }
  0x13   :  { %1107 = vpow2.f32 %v169_v49  ;;  %38 = vst.msk [vmem:[#allocation2 + $0x40] sm:$0xff] %vm29_vm0, %v1213_v14  ;;  %39 = vst.msk [vmem:[#allocation2 + $0x48] sm:$0xff] %vm29_vm0, %v1213_v14  ;;  %v245_v28 = vmul.f32 1.442695, %v243_v22  ;;  %v283_v35 = vmul.f32 -50.0, %v281_v29  ;;  %vm909_vm5 = vcmask 48128  }
  0x14   :  { %v1285_v32 = vpop.eup %1091  ;;  %1109 = vpow2.f32 %v106_v5  ;;  %40 = vst.msk [vmem:[#allocation2 + $0x50] sm:$0xff] %vm29_vm0, %v1213_v14  ;;  %41 = vst.msk [vmem:[#allocation2 + $0x58] sm:$0xff] %vm29_vm0, %v1213_v14  ;;  %vm912_vm6 = vcmask 56320   ;;  %vm915_vm7 = vcmask 64512   ;;  %vm918_vm8 = vcmask 72704  }
  0x15   :  { %42 = vst.msk [vmem:[#allocation2 + $0x60] sm:$0xff] %vm29_vm0, %v1213_v14  ;;  %43 = vst.msk [vmem:[#allocation2 + $0x68] sm:$0xff] %vm29_vm0, %v1213_v14  ;;  %1111 = vpow2.f32 %v207_v20  ;;  %v285_v39 = vmul.f32 1.442695, %v283_v35  ;;  %vm921_vm9 = vcmask 80896   ;;  %vm924_vm10 = vcmask 81920  }
  0x16   :  { %v1094_v33 = vpop.eup %1093  ;;  %44 = vst.msk [vmem:[#allocation2 + $0x70] sm:$0xff] %vm29_vm0, %v1213_v14  ;;  %45 = vst.msk [vmem:[#allocation2 + $0x78] sm:$0xff] %vm29_vm0, %v1213_v14  ;;  %1113 = vpow2.f32 %v245_v28  ;;  %v132_v60 = vld [vmem:[#allocation2 + $0x10] sm:$0xff] }
  0x17   :  { %v144_v37 = vmul.f32 %v1094_v33, %v1285_v32  ;;  %v1288_v40 = vpop.eup %1095  ;;  %46 = vst.msk [vmem:[#allocation2 + $0x80] sm:$0xff] %vm29_vm0, %v1213_v14  ;;  %47 = vst.msk [vmem:[#allocation2 + $0x88] sm:$0xff] %vm29_vm0, %v1213_v14  ;;  %1115 = vpow2.f32 %v285_v39  ;;  %v133_v5 = vld [vmem:[#allocation2 + $0x18] sm:$0xff] }
  0x18   :  { %v1098_v44 = vpop.eup %1097  ;;  %48 = vst.msk [vmem:[#allocation2 + $0x90] sm:$0xff] %vm29_vm0, %v1213_v14  ;;  %49 = vst.msk [vmem:[#allocation2 + $0x98] sm:$0xff] %vm29_vm0, %v1213_v14 }
  0x19   :  { %v146_v45 = vmul.f32 8886111.0, %v144_v37  ;;  %v1293_v46 = vpop.eup %1099  ;;  %v145_v55 = vmul.f32 %v1098_v44, %v1288_v40  ;;  %50 = vst.msk [vmem:[#allocation2 + $0xa0] sm:$0xff] %vm29_vm0, %v1213_v14  ;;  %51 = vst.msk [vmem:[#allocation2 + $0xa8] sm:$0xff] %vm29_vm0, %v1213_v14  ;;  %v173_v29 = vld [vmem:[#allocation2 + $0x38] sm:$0xff] }
  0x1a   :  { %v225_v54 = vmul.f32 %v1293_v46, %v1288_v40  ;;  %v1102_v56 = vpop.eup %1101 }
  0x1b   :  { %v147_v63 = vmul.f32 8886111.0, %v145_v55  ;;  %v263_v1 = vmul.f32 %v1102_v56, %v1288_v40  ;;  %v1104_v7 = vpop.eup %1103 }
  0x1c   :  { %v1106_v11 = vpop.eup %1105  ;;  %v184_v18 = vmul.f32 %v1104_v7, %v1285_v32 }
  0x1d   :  { %v265_v10 = vmul.f32 0.00033546262, %v263_v1  ;;  %v1108_v15 = vpop.eup %1107  ;;  %v303_v19 = vmul.f32 %v1106_v11, %v1288_v40 }
  0x1e   :  { %v185_v21 = vmul.f32 %v1108_v15, %v1288_v40  ;;  %v186_v26 = vmul.f32 2980.958, %v184_v18  ;;  %v1110_v34 = vpop.eup %1109  ;;  %v1063_v40 = vadd.f32 -1.0, %v1277_v3  ;;  %v268_v18 = vld [vmem:[#allocation2 + $0x88] sm:$0xff] }
  0x1f   :  { %v305_v27 = vmul.f32 1.12535176e-07, %v303_v19  ;;  %v1112_v38 = vpop.eup %1111 }
  0x20   :  { %v100_v42 = vmul.f32 %v1063_v40, %v1063_v40 }
  0x81   :  { %v73_v47 = vpop.permute.xlu0 %72 }
  0x82   :  { %v1295_v48 = vmul.f32 %v1061_v41, %v73_v47  ;;  %v102_v47 = vmul.f32 -50000000.0, %v100_v42 }
  0x84   :  { %v134_v52 = vmul.f32 %v1094_v33, %v1295_v48  ;;  %v151_v53 = vmul.f32 %v146_v45, %v1295_v48  ;;  %v174_v16 = vmul.f32 %v1104_v7, %v1295_v48  ;;  %v191_v30 = vmul.f32 %v186_v26, %v1295_v48  ;;  %v1114_v45 = vpop.eup %1113 }
  0x85   :  { %v78_v57 = vpop.permute.xlu0 %77  ;;  %v187_v33 = vmul.f32 2980.958, %v185_v21  ;;  %v214_v41 = vmul.f32 %v1112_v38, %v1295_v48  ;;  %v104_v51 = vmul.f32 1.442695, %v102_v47  ;;  %v252_v3 = vmul.f32 %v1114_v45, %v1295_v48  ;;  %v189_v47 = vld [vmem:[#allocation2 + $0x40] sm:$0xff] }
  0x86   :  { %v1306_v59 = vmul.f32 %v1062_v50, %v78_v57  ;;  %136 = vadd.xlane.f32.xlu1 %v134_v52  ;;  %153 = vadd.xlane.f32.xlu0 %v151_v53  ;;  %v262_v50 = vmul.f32 %v1114_v45, %v1285_v32  ;;  %v1116_v53 = vpop.eup %1115 }
  0x87   :  { %1117 = vpow2.f32 %v104_v51  ;;  %v292_v55 = vmul.f32 %v1116_v53, %v1295_v48 }
  0x88   :  { %v135_v61 = vmul.f32 %v1098_v44, %v1306_v59  ;;  %v230_v62 = vmul.f32 %v225_v54, %v1306_v59  ;;  %v152_v8 = vmul.f32 %v147_v63, %v1306_v59  ;;  %v253_v9 = vmul.f32 %v1102_v56, %v1306_v59 }
  0x89   :  { %v270_v17 = vmul.f32 %v265_v10, %v1306_v59  ;;  %v175_v24 = vmul.f32 %v1108_v15, %v1306_v59  ;;  %v293_v25 = vmul.f32 %v1106_v11, %v1306_v59  ;;  %v310_v31 = vmul.f32 %v305_v27, %v1306_v59  ;;  %v150_v10 = vld [vmem:[#allocation2 + $0x28] sm:$0xff]  ;;  %v251_v11 = vld [vmem:[#allocation2 + $0x78] sm:$0xff] }
  0x8a   :  { %138 = vadd.xlane.f32.xlu1 %v135_v61  ;;  %233 = vadd.xlane.f32.xlu0 %v230_v62  ;;  %v192_v36 = vmul.f32 %v187_v33, %v1306_v59  ;;  %v111_v37 = vmul.f32 %v1110_v34, %v1306_v59  ;;  %v215_v43 = vmul.f32 %v1293_v46, %v1306_v59  ;;  %v264_v52 = vmul.f32 0.00033546262, %v262_v50  ;;  %v149_v61 = vld [vmem:[#allocation2 + $0x20] sm:$0xff]  ;;  %v308_v50 = vld [vmem:[#allocation2 + $0xa8] sm:$0xff] }
  0x8b   :  { %v224_v44 = vmul.f32 %v1112_v38, %v1285_v32  ;;  %v302_v46 = vmul.f32 %v1116_v53, %v1285_v32  ;;  %v228_v32 = vld [vmem:[#allocation2 + $0x68] sm:$0xff] }
  0x8c   :  { %v269_v54 = vmul.f32 %v264_v52, %v1295_v48 }
  0x8d   :  { %v229_v49 = vmul.f32 %v224_v44, %v1295_v48  ;;  %v304_v56 = vmul.f32 1.12535176e-07, %v302_v46 }
  0x8e   :  { %155 = vadd.xlane.f32.xlu1 %v152_v8  ;;  %256 = vadd.xlane.f32.xlu0 %v253_v9  ;;  %v325_v8 = vstv %s1749_s4 }
  0x8f   :  { %v309_v57 = vmul.f32 %v304_v56, %v1295_v48  ;;  %v1369_v12 = vmul.f32 %v325_v8, %v1265_v0  ;;  %v1375_v23 = vmul.f32 %v325_v8, %v1271_v2 }
  0x91   :  { %v1118_v58 = vpop.eup %1117 }
  0x92   :  { %176 = vadd.xlane.f32.xlu1 %v174_v16  ;;  %273 = vadd.xlane.f32.xlu0 %v270_v17  ;;  %v110_v59 = vmul.f32 %v1118_v58, %v1295_v48  ;;  %v172_v17 = vld [vmem:[#allocation2 + $0x30] sm:$0xff] }
  0x96   :  { %178 = vadd.xlane.f32.xlu1 %v175_v24  ;;  %296 = vadd.xlane.f32.xlu0 %v293_v25 }
  0x9a   :  { %193 = vadd.xlane.f32.xlu1 %v191_v30  ;;  %313 = vadd.xlane.f32.xlu0 %v310_v31  ;;  %v291_v31 = vld [vmem:[#allocation2 + $0x98] sm:$0xff] }
  0x9e   :  { %195 = vadd.xlane.f32.xlu1 %v192_v36  ;;  %114 = vadd.xlane.f32.xlu0 %v111_v37 }
  0xa2   :  { %216 = vadd.xlane.f32.xlu1 %v214_v41 }
  0xa6   :  { %218 = vadd.xlane.f32.xlu1 %v215_v43 }
  0xaa   :  { %231 = vadd.xlane.f32.xlu1 %v229_v49 }
  0xae   :  { %254 = vadd.xlane.f32.xlu1 %v252_v3 }
  0xb2   :  { %271 = vadd.xlane.f32.xlu1 %v269_v54 }
  0xb6   :  { %294 = vadd.xlane.f32.xlu1 %v292_v55 }
  0xba   :  { %311 = vadd.xlane.f32.xlu1 %v309_v57 }
  0xbe   :  { %112 = vadd.xlane.f32.xlu1 %v110_v59 }
 0x113   :  { %v137_v62 = vpop.xlane.xlu1 %136  ;;  %v154_v63 = vpop.xlane.xlu0 %153 }
 0x114   :  { %v140_v1 = vadd.f32 %v137_v62, %v132_v60  ;;  %v157_v4 = vadd.f32 %v154_v63, %v149_v61 }
 0x116   :  { %142 = vst.msk [vmem:[#allocation2 + $0x10] sm:$0xff] %vm29_vm0, %v140_v1  ;;  %159 = vst.msk [vmem:[#allocation2 + $0x20] sm:$0xff] %vm29_vm0, %v157_v4 }
 0x117   :  { %v139_v6 = vpop.xlane.xlu1 %138  ;;  %v234_v7 = vpop.xlane.xlu0 %233 }
 0x118   :  { %v141_v48 = vadd.f32 %v139_v6, %v133_v5  ;;  %v236_v9 = vadd.f32 %v234_v7, %v228_v32  ;;  %v190_v32 = vld [vmem:[#allocation2 + $0x48] sm:$0xff] }
 0x119   :  { %v109_v6 = vld [vmem:[#allocation2 + $0x8] sm:$0xff] }
 0x11a   :  { %143 = vst.msk [vmem:[#allocation2 + $0x18] sm:$0xff] %vm29_vm0, %v141_v48  ;;  %238 = vst.msk [vmem:[#allocation2 + $0x68] sm:$0xff] %vm29_vm0, %v236_v9 }
 0x11b   :  { %v156_v13 = vpop.xlane.xlu1 %155  ;;  %v257_v14 = vpop.xlane.xlu0 %256 }
 0x11c   :  { %v158_v15 = vadd.f32 %v156_v13, %v150_v10  ;;  %v259_v16 = vadd.f32 %v257_v14, %v251_v11  ;;  %v1398_v11 = vld [vmem:[%s1748_s3] sm:$0x1] }
 0x11d   :  { %v375_v19 = vld [vmem:[#allocation2 + $0x10] sm:$0xff]  ;;  %v419_v20 = vld [vmem:[#allocation2 + $0x20] sm:$0xff] }
 0x11e   :  { %160 = vst.msk [vmem:[#allocation2 + $0x28] sm:$0xff] %vm29_vm0, %v158_v15  ;;  %261 = vst.msk [vmem:[#allocation2 + $0x78] sm:$0xff] %vm29_vm0, %v259_v16  ;;  %v401_v21 = vmul.f32 %v375_v19, %v1369_v12  ;;  %v377_v22 = vmax.f32 %v375_v19, 1e-10  ;;  %v445_v0 = vmul.f32 %v419_v20, %v1369_v12  ;;  %v421_v26 = vmax.f32 %v419_v20, 1e-10 }
 0x11f   :  { %v177_v24 = vpop.xlane.xlu1 %176  ;;  %v274_v25 = vpop.xlane.xlu0 %273 }
 0x120   :  { %v180_v27 = vadd.f32 %v177_v24, %v172_v17  ;;  %v276_v28 = vadd.f32 %v274_v25, %v268_v18  ;;  %v403_v30 = vsel %vm29_vm0, %v401_v21, 0.0  ;;  %1119 = vlog2.f32 %v377_v22 }
 0x121   :  { %v404_v33 = vrot.slane %v403_v30, 4  ;;  %v376_v34 = vld [vmem:[#allocation2 + $0x18] sm:$0xff]  ;;  %v447_v35 = vsel %vm29_vm0, %v445_v0, 0.0  ;;  %v596_v36 = vld [vmem:[#allocation2 + $0x68] sm:$0xff]  ;;  %1121 = vlog2.f32 %v421_v26 }
 0x122   :  { %182 = vst.msk [vmem:[#allocation2 + $0x30] sm:$0xff] %vm29_vm0, %v180_v27  ;;  %278 = vst.msk [vmem:[#allocation2 + $0x88] sm:$0xff] %vm29_vm0, %v276_v28  ;;  %v402_v2 = vmul.f32 %v376_v34, %v1375_v23  ;;  %v378_v37 = vmax.f32 %v376_v34, 1e-10  ;;  %v448_v38 = vrot.slane %v447_v35, 4  ;;  %v622_v43 = vmul.f32 %v596_v36, %v1375_v23  ;;  %v212_v27 = vld [vmem:[#allocation2 + $0x50] sm:$0xff] }
 0x123   :  { %v598_v39 = vmax.f32 %v596_v36, 1e-10  ;;  %v179_v40 = vpop.xlane.xlu1 %178  ;;  %v297_v41 = vpop.xlane.xlu0 %296  ;;  %v405_v42 = vadd.f32 %v404_v33, %v403_v30 }
 0x124   :  { %v181_v44 = vadd.f32 %v179_v40, %v173_v29  ;;  %v299_v45 = vadd.f32 %v297_v41, %v291_v31  ;;  %v410_v49 = vsel %vm29_vm0, %v402_v2, 0.0  ;;  %1123 = vlog2.f32 %v378_v37 }
 0x125   :  { %v406_v51 = vrot.slane %v405_v42, 2  ;;  %v411_v3 = vrot.slane %v410_v49, 4  ;;  %v449_v52 = vadd.f32 %v448_v38, %v447_v35  ;;  %v420_v53 = vld [vmem:[#allocation2 + $0x28] sm:$0xff]  ;;  %1125 = vlog2.f32 %v598_v39  ;;  %v1385_v54 = vld [vmem:[#allocation2 + $0x78] sm:$0xff]  ;;  %v1414_v35 = vld [vmem:[%s1748_s3 + $0x1] sm:$0x1] }
 0x126   :  { %183 = vst.msk [vmem:[#allocation2 + $0x38] sm:$0xff] %vm29_vm0, %v181_v44  ;;  %301 = vst.msk [vmem:[#allocation2 + $0x98] sm:$0xff] %vm29_vm0, %v299_v45  ;;  %v422_v46 = vmax.f32 %v420_v53, 1e-10  ;;  %v446_v55 = vmul.f32 %v420_v53, %v1375_v23  ;;  %v630_v56 = vsel %vm29_vm0, %v622_v43, 0.0  ;;  %v666_v44 = vmul.f32 %v1385_v54, %v1375_v23 }
 0x127   :  { %v642_v57 = vmax.f32 %v1385_v54, 1e-10  ;;  %v194_v58 = vpop.xlane.xlu1 %193  ;;  %v314_v59 = vpop.xlane.xlu0 %313  ;;  %v407_v60 = vadd.f32 %v406_v51, %v405_v42  ;;  %v412_v61 = vadd.f32 %v411_v3, %v410_v49  ;;  %v450_v62 = vrot.slane %v449_v52, 2 }
 0x128   :  { %v631_v63 = vrot.slane %v630_v56, 4  ;;  %v197_v1 = vadd.f32 %v194_v58, %v189_v47  ;;  %v316_v4 = vadd.f32 %v314_v59, %v308_v50  ;;  %1127 = vlog2.f32 %v422_v46  ;;  %v213_v50 = vld [vmem:[#allocation2 + $0x58] sm:$0xff] }
 0x129   :  { %v454_v5 = vsel %vm29_vm0, %v446_v55, 0.0  ;;  %v408_v7 = vrot.slane %v407_v60, 1  ;;  %v413_v8 = vrot.slane %v412_v61, 2  ;;  %v451_v48 = vadd.f32 %v450_v62, %v449_v52  ;;  %v463_v10 = vld [vmem:[#allocation2 + $0x30] sm:$0xff] }
 0x12a   :  { %v455_v9 = vrot.slane %v454_v5, 4  ;;  %199 = vst.msk [vmem:[#allocation2 + $0x40] sm:$0xff] %vm29_vm0, %v197_v1  ;;  %318 = vst.msk [vmem:[#allocation2 + $0xa8] sm:$0xff] %vm29_vm0, %v316_v4  ;;  %v465_v13 = vmax.f32 %v463_v10, 1e-10  ;;  %v489_v14 = vmul.f32 %v463_v10, %v1369_v12  ;;  %v632_v15 = vadd.f32 %v631_v63, %v630_v56  ;;  %v1401_v16 = vpop.eup %1119 }
 0x12b   :  { %1129 = vlog2.f32 %v642_v57  ;;  %v196_v17 = vpop.xlane.xlu1 %195  ;;  %v115_v18 = vpop.xlane.xlu0 %114  ;;  %v409_v19 = vadd.f32 %v408_v7, %v407_v60  ;;  %v414_v20 = vadd.f32 %v413_v8, %v412_v61  ;;  %v452_v21 = vrot.slane %v451_v48, 1  ;;  %v227_v7 = vld [vmem:[#allocation2 + $0x60] sm:$0xff] }
 0x12c   :  { %v456_v22 = vadd.f32 %v455_v9, %v454_v5  ;;  %v198_v0 = vadd.f32 %v196_v17, %v190_v32  ;;  %v117_v24 = vadd.f32 %v115_v18, %v109_v6  ;;  %1131 = vlog2.f32 %v465_v13  ;;  %v1404_v26 = vpop.eup %1121  ;;  %v684_v6 = vld [vmem:[#allocation2 + $0x88] sm:$0xff] }
 0x12d   :  { %v491_v25 = vsel %vm29_vm0, %v489_v14, 0.0  ;;  %v417_v28 = vmul.f32 %v409_v19, %v1398_v11  ;;  %v415_v29 = vrot.slane %v414_v20, 1  ;;  %v453_v30 = vadd.f32 %v452_v21, %v451_v48  ;;  %v464_v33 = vld [vmem:[#allocation2 + $0x38] sm:$0xff] }
 0x12e   :  { %v457_v31 = vrot.slane %v456_v22, 2  ;;  %v1407_v34 = vpop.eup %1123  ;;  %200 = vst.msk [vmem:[#allocation2 + $0x48] sm:$0xff] %vm29_vm0, %v198_v0  ;;  %120 = vst.msk [vmem:[#allocation2 + $0x8] sm:$0xff] %vm29_vm0, %v117_v24  ;;  %v492_v36 = vrot.slane %v491_v25, 4  ;;  %v466_v2 = vmax.f32 %v464_v33, 1e-10  ;;  %v490_v37 = vmul.f32 %v464_v33, %v1375_v23 }
 0x12f   :  { %v633_v38 = vrot.slane %v632_v15, 2  ;;  %v1417_v39 = vpop.eup %1125  ;;  %v217_v40 = vpop.xlane.xlu1 %216  ;;  %929 = vrot.lane.b32.xlu0 %v417_v28, %s1214_s11  ;;  %v416_v41 = vadd.f32 %v415_v29, %v414_v20  ;;  %v461_v42 = vmul.f32 %v453_v30, %v1398_v11  ;;  %v674_v58 = vsel %vm29_vm0, %v666_v44, 0.0 }
 0x130   :  { %v458_v43 = vadd.f32 %v457_v31, %v456_v22  ;;  %v220_v45 = vadd.f32 %v217_v40, %v212_v27  ;;  %v493_v47 = vadd.f32 %v492_v36, %v491_v25  ;;  %1133 = vlog2.f32 %v466_v2  ;;  %v250_v27 = vld [vmem:[#allocation2 + $0x70] sm:$0xff] }
 0x131   :  { %v498_v49 = vsel %vm29_vm0, %v490_v37, 0.0  ;;  %v418_v51 = vmul.f32 %v416_v41, %v1414_v35  ;;  %v507_v53 = vld [vmem:[#allocation2 + $0x40] sm:$0xff]  ;;  %v634_v46 = vadd.f32 %v633_v38, %v632_v15  ;;  %v675_v63 = vrot.slane %v674_v58, 4 }
 0x132   :  { %v459_v3 = vrot.slane %v458_v43, 1  ;;  %v499_v52 = vrot.slane %v498_v49, 4  ;;  %v1425_v55 = vpop.eup %1127  ;;  %222 = vst.msk [vmem:[#allocation2 + $0x50] sm:$0xff] %vm29_vm0, %v220_v45  ;;  %v494_v56 = vrot.slane %v493_v47, 2  ;;  %v509_v57 = vmax.f32 %v507_v53, 1e-10 }
 0x133   :  { %v533_v54 = vmul.f32 %v507_v53, %v1369_v12  ;;  %v219_v59 = vpop.xlane.xlu1 %218  ;;  %931 = vrot.lane.b32.xlu1 %v418_v51, %s1214_s11  ;;  %937 = vrot.lane.b32.xlu0 %v461_v42, %s1215_s12  ;;  %v635_v62 = vrot.slane %v634_v46, 1  ;;  %v676_v19 = vadd.f32 %v675_v63, %v674_v58  ;;  %v686_v24 = vmax.f32 %v684_v6, 1e-10 }
 0x134   :  { %v460_v60 = vadd.f32 %v459_v3, %v458_v43  ;;  %v500_v61 = vadd.f32 %v499_v52, %v498_v49  ;;  %v221_v4 = vadd.f32 %v219_v59, %v213_v50  ;;  %v495_v5 = vadd.f32 %v494_v56, %v493_v47  ;;  %v267_v3 = vld [vmem:[#allocation2 + $0x80] sm:$0xff] }
 0x135   :  { %v1432_v1 = vpop.eup %1129  ;;  %1135 = vlog2.f32 %v509_v57  ;;  %v535_v32 = vsel %vm29_vm0, %v533_v54, 0.0  ;;  %v508_v10 = vld [vmem:[#allocation2 + $0x48] sm:$0xff]  ;;  %v636_v13 = vadd.f32 %v635_v62, %v634_v46  ;;  %v677_v2 = vrot.slane %v676_v19, 2 }
 0x136   :  { %v462_v8 = vmul.f32 %v460_v60, %v1414_v35  ;;  %v501_v48 = vrot.slane %v500_v61, 2  ;;  %v536_v9 = vrot.slane %v535_v32, 4  ;;  %v1436_v14 = vpop.eup %1131  ;;  %223 = vst.msk [vmem:[#allocation2 + $0x58] sm:$0xff] %vm29_vm0, %v221_v4  ;;  %v496_v15 = vrot.slane %v495_v5, 1 }
 0x137   :  { %v510_v17 = vmax.f32 %v508_v10, 1e-10  ;;  %v534_v18 = vmul.f32 %v508_v10, %v1375_v23  ;;  %v232_v20 = vpop.xlane.xlu1 %231  ;;  %v1442_v0 = vmul.f32 %v636_v13, %v1414_v35  ;;  %v678_v47 = vadd.f32 %v677_v2, %v676_v19 }
 0x138   :  { %939 = vrot.lane.b32.xlu1 %v462_v8, %s1215_s12  ;;  %v502_v21 = vadd.f32 %v501_v48, %v500_v61  ;;  %v537_v22 = vadd.f32 %v536_v9, %v535_v32  ;;  %v235_v25 = vadd.f32 %v232_v20, %v227_v7  ;;  %v497_v28 = vadd.f32 %v496_v15, %v495_v5  ;;  %v728_v48 = vld [vmem:[#allocation2 + $0x98] sm:$0xff]  ;;  %v290_v9 = vld [vmem:[#allocation2 + $0x90] sm:$0xff] }
 0x139   :  { %1137 = vlog2.f32 %v510_v17  ;;  %v542_v29 = vsel %vm29_vm0, %v534_v18, 0.0  ;;  %v551_v36 = vld [vmem:[#allocation2 + $0x50] sm:$0xff]  ;;  %v710_v51 = vmul.f32 %v684_v6, %v1375_v23  ;;  %v679_v60 = vrot.slane %v678_v47, 1 }
 0x13a   :  { %v503_v30 = vrot.slane %v502_v21, 1  ;;  %v538_v31 = vrot.slane %v537_v22, 2  ;;  %v543_v33 = vrot.slane %v542_v29, 4  ;;  %v1445_v37 = vpop.eup %1133  ;;  %237 = vst.msk [vmem:[#allocation2 + $0x60] sm:$0xff] %vm29_vm0, %v235_v25  ;;  %v505_v38 = vmul.f32 %v497_v28, %v1398_v11 }
 0x13b   :  { %v553_v40 = vmax.f32 %v551_v36, 1e-10  ;;  %v577_v41 = vmul.f32 %v551_v36, %v1369_v12  ;;  %1139 = vlog2.f32 %v686_v24  ;;  %v255_v42 = vpop.xlane.xlu1 %254  ;;  %v718_v61 = vsel %vm29_vm0, %v710_v51, 0.0 }
 0x13c   :  { %v504_v43 = vadd.f32 %v503_v30, %v502_v21  ;;  %v539_v44 = vadd.f32 %v538_v31, %v537_v22  ;;  %v544_v45 = vadd.f32 %v543_v33, %v542_v29  ;;  %v258_v49 = vadd.f32 %v255_v42, %v250_v27  ;;  %945 = vrot.lane.b32.xlu0 %v505_v38, %s1216_s13  ;;  %v307_v38 = vld [vmem:[#allocation2 + $0xa0] sm:$0xff] }
 0x13d   :  { %1141 = vlog2.f32 %v553_v40  ;;  %v579_v50 = vsel %vm29_vm0, %v577_v41, 0.0  ;;  %v552_v57 = vld [vmem:[#allocation2 + $0x58] sm:$0xff]  ;;  %v719_v32 = vrot.slane %v718_v61, 4  ;;  %v680_v8 = vadd.f32 %v679_v60, %v678_v47 }
 0x13e   :  { %v506_v52 = vmul.f32 %v504_v43, %v1414_v35  ;;  %v540_v53 = vrot.slane %v539_v44, 1  ;;  %v545_v46 = vrot.slane %v544_v45, 2  ;;  %v580_v56 = vrot.slane %v579_v50, 4  ;;  %260 = vst.msk [vmem:[#allocation2 + $0x70] sm:$0xff] %vm29_vm0, %v258_v49 }
 0x13f   :  { %v1454_v54 = vpop.eup %1135  ;;  %v554_v58 = vmax.f32 %v552_v57, 1e-10  ;;  %v578_v59 = vmul.f32 %v552_v57, %v1375_v23  ;;  %v272_v62 = vpop.xlane.xlu1 %271  ;;  %v1467_v22 = vmul.f32 %v680_v8, %v1414_v35  ;;  %v720_v24 = vadd.f32 %v719_v32, %v718_v61 }
 0x140   :  { %947 = vrot.lane.b32.xlu1 %v506_v52, %s1216_s13  ;;  %v541_v63 = vadd.f32 %v540_v53, %v539_v44  ;;  %v546_v4 = vadd.f32 %v545_v46, %v544_v45  ;;  %v581_v5 = vadd.f32 %v580_v56, %v579_v50  ;;  %v275_v6 = vadd.f32 %v272_v62, %v267_v3 }
 0x141   :  { %1143 = vlog2.f32 %v554_v58  ;;  %v586_v7 = vsel %vm29_vm0, %v578_v59, 0.0  ;;  %v595_v18 = vld [vmem:[#allocation2 + $0x60] sm:$0xff]  ;;  %v730_v30 = vmax.f32 %v728_v48, 1e-10  ;;  %v721_v2 = vrot.slane %v720_v24, 2 }
 0x142   :  { %v549_v10 = vmul.f32 %v541_v63, %v1398_v11  ;;  %v547_v13 = vrot.slane %v546_v4, 1  ;;  %v582_v15 = vrot.slane %v581_v5, 2  ;;  %v587_v17 = vrot.slane %v586_v7, 4  ;;  %277 = vst.msk [vmem:[#allocation2 + $0x80] sm:$0xff] %vm29_vm0, %v275_v6  ;;  %v108_v59 = vld [vmem:[#allocation2] sm:$0xff] }
 0x143   :  { %v1462_v19 = vpop.eup %1137  ;;  %v597_v20 = vmax.f32 %v595_v18, 1e-10  ;;  %v621_v21 = vmul.f32 %v595_v18, %v1369_v12  ;;  %v295_v25 = vpop.xlane.xlu1 %294  ;;  %v722_v50 = vadd.f32 %v721_v2, %v720_v24  ;;  %v754_v46 = vmul.f32 %v728_v48, %v1375_v23 }
 0x144   :  { %953 = vrot.lane.b32.xlu0 %v549_v10, %s1217_s14  ;;  %v548_v27 = vadd.f32 %v547_v13, %v546_v4  ;;  %v583_v28 = vadd.f32 %v582_v15, %v581_v5  ;;  %v588_v29 = vadd.f32 %v587_v17, %v586_v7  ;;  %v298_v33 = vadd.f32 %v295_v25, %v290_v9 }
 0x145   :  { %v1470_v31 = vpop.eup %1139  ;;  %1145 = vlog2.f32 %v597_v20  ;;  %v623_v36 = vsel %vm29_vm0, %v621_v21, 0.0  ;;  %v639_v44 = vld [vmem:[#allocation2 + $0x70] sm:$0xff]  ;;  %v723_v58 = vrot.slane %v722_v50, 1  ;;  %v762_v8 = vsel %vm29_vm0, %v754_v46, 0.0 }
 0x146   :  { %v550_v40 = vmul.f32 %v548_v27, %v1414_v35  ;;  %v584_v41 = vrot.slane %v583_v28, 1  ;;  %v589_v42 = vrot.slane %v588_v29, 2  ;;  %v624_v43 = vrot.slane %v623_v36, 4  ;;  %300 = vst.msk [vmem:[#allocation2 + $0x90] sm:$0xff] %vm29_vm0, %v298_v33 }
 0x147   :  { %v1474_v45 = vpop.eup %1141  ;;  %v641_v47 = vmax.f32 %v639_v44, 1e-10  ;;  %v665_v49 = vmul.f32 %v639_v44, %v1369_v12  ;;  %1147 = vlog2.f32 %v730_v30  ;;  %v312_v51 = vpop.xlane.xlu1 %311  ;;  %v724_v32 = vadd.f32 %v723_v58, %v722_v50 }
 0x148   :  { %955 = vrot.lane.b32.xlu1 %v550_v40, %s1217_s14  ;;  %v585_v3 = vadd.f32 %v584_v41, %v583_v28  ;;  %v590_v52 = vadd.f32 %v589_v42, %v588_v29  ;;  %v625_v53 = vadd.f32 %v624_v43, %v623_v36  ;;  %v315_v56 = vadd.f32 %v312_v51, %v307_v38 }
 0x149   :  { %1149 = vlog2.f32 %v641_v47  ;;  %v667_v57 = vsel %vm29_vm0, %v665_v49, 0.0  ;;  %v683_v4 = vld [vmem:[#allocation2 + $0x80] sm:$0xff]  ;;  %v763_v15 = vrot.slane %v762_v8, 4  ;;  %v1489_v18 = vmul.f32 %v724_v32, %v1414_v35 }
 0x14a   :  { %v593_v60 = vmul.f32 %v585_v3, %v1398_v11  ;;  %v591_v61 = vrot.slane %v590_v52, 1  ;;  %v626_v62 = vrot.slane %v625_v53, 2  ;;  %v668_v63 = vrot.slane %v667_v57, 4  ;;  %317 = vst.msk [vmem:[#allocation2 + $0xa0] sm:$0xff] %vm29_vm0, %v315_v56 }
 0x14b   :  { %v1482_v5 = vpop.eup %1143  ;;  %v685_v6 = vmax.f32 %v683_v4, 1e-10  ;;  %v709_v7 = vmul.f32 %v683_v4, %v1369_v12  ;;  %v113_v48 = vpop.xlane.xlu1 %112  ;;  %v764_v30 = vadd.f32 %v763_v15, %v762_v8  ;;  %v382_v2 = vmul.f32 0.6931472, %v1407_v34 }
 0x14c   :  { %961 = vrot.lane.b32.xlu0 %v593_v60, %s1218_s15  ;;  %v592_v9 = vadd.f32 %v591_v61, %v590_v52  ;;  %v627_v10 = vadd.f32 %v626_v62, %v625_v53  ;;  %v669_v13 = vadd.f32 %v668_v63, %v667_v57  ;;  %v116_v17 = vadd.f32 %v113_v48, %v108_v59 }
 0x14d   :  { %1151 = vlog2.f32 %v685_v6  ;;  %v711_v20 = vsel %vm29_vm0, %v709_v7, 0.0  ;;  %v727_v28 = vld [vmem:[#allocation2 + $0x90] sm:$0xff]  ;;  %v380_v42 = vmul.f32 0.6931472, %v1401_v16  ;;  %v765_v44 = vrot.slane %v764_v30, 2 }
 0x14e   :  { %v594_v21 = vmul.f32 %v592_v9, %v1414_v35  ;;  %v628_v24 = vrot.slane %v627_v10, 1  ;;  %v670_v25 = vrot.slane %v669_v13, 2  ;;  %v712_v27 = vrot.slane %v711_v20, 4  ;;  %119 = vst.msk [vmem:[#allocation2] sm:$0xff] %vm29_vm0, %v116_v17 }
 0x14f   :  { %v1493_v29 = vpop.eup %1145  ;;  %v729_v33 = vmax.f32 %v727_v28, 1e-10  ;;  %v753_v36 = vmul.f32 %v727_v28, %v1369_v12  ;;  %v384_v49 = vmul.f32 1.442695, %v382_v2  ;;  %v766_v53 = vadd.f32 %v765_v44, %v764_v30 }
 0x150   :  { %963 = vrot.lane.b32.xlu1 %v594_v21, %s1218_s15  ;;  %v629_v38 = vadd.f32 %v628_v24, %v627_v10  ;;  %v671_v40 = vadd.f32 %v670_v25, %v669_v13  ;;  %v713_v41 = vadd.f32 %v712_v27, %v711_v20  ;;  %v383_v56 = vmul.f32 1.442695, %v380_v42 }
 0x151   :  { %v1500_v43 = vpop.eup %1147  ;;  %1153 = vlog2.f32 %v729_v33  ;;  %v755_v47 = vsel %vm29_vm0, %v753_v36, 0.0  ;;  %v386_v46 = vmul.f32 %v384_v49, %v1375_v23  ;;  %v468_v16 = vmul.f32 0.6931472, %v1436_v14 }
 0x152   :  { %v637_v50 = vmul.f32 %v629_v38, %v1398_v11  ;;  %v672_v51 = vrot.slane %v671_v40, 1  ;;  %v714_v3 = vrot.slane %v713_v41, 2  ;;  %v756_v52 = vrot.slane %v755_v47, 4 }
 0x153   :  { %v1504_v34 = vpop.eup %1149  ;;  %v424_v60 = vmul.f32 0.6931472, %v1404_v26  ;;  %v767_v61 = vrot.slane %v766_v53, 1  ;;  %v394_v62 = vsel %vm29_vm0, %v386_v46, 0.0  ;;  %v385_v63 = vmul.f32 %v383_v56, %v1369_v12 }
 0x154   :  { %971 = vrot.lane.b32.xlu1 %v1442_v0, %s1219_s16  ;;  %969 = vrot.lane.b32.xlu0 %v637_v50, %s1219_s16  ;;  %v673_v57 = vadd.f32 %v672_v51, %v671_v40  ;;  %v715_v58 = vadd.f32 %v714_v3, %v713_v41  ;;  %v757_v59 = vadd.f32 %v756_v52, %v755_v47  ;;  %v471_v4 = vmul.f32 1.442695, %v468_v16 }
 0x155   :  { %v395_v7 = vrot.slane %v394_v62, 4  ;;  %v768_v0 = vadd.f32 %v767_v61, %v766_v53  ;;  %v387_v48 = vsel %vm29_vm0, %v385_v63, 0.0  ;;  %v427_v10 = vmul.f32 1.442695, %v424_v60 }
 0x156   :  { %v681_v32 = vmul.f32 %v673_v57, %v1398_v11  ;;  %v716_v14 = vrot.slane %v715_v58, 1  ;;  %v758_v6 = vrot.slane %v757_v59, 2  ;;  %v473_v9 = vmul.f32 %v471_v4, %v1369_v12 }
 0x157   :  { %v1515_v8 = vpop.eup %1151  ;;  %v396_v15 = vadd.f32 %v395_v7, %v394_v62  ;;  %v388_v17 = vrot.slane %v387_v48, 4  ;;  %v770_v20 = vmul.f32 %v768_v0, %v1414_v35  ;;  %v429_v24 = vmul.f32 %v427_v10, %v1369_v12 }
 0x158   :  { %979 = vrot.lane.b32.xlu1 %v1467_v22, %s1220_s17  ;;  %977 = vrot.lane.b32.xlu0 %v681_v32, %s1220_s17  ;;  %v717_v26 = vadd.f32 %v716_v14, %v715_v58  ;;  %v759_v13 = vadd.f32 %v758_v6, %v757_v59  ;;  %v475_v21 = vsel %vm29_vm0, %v473_v9, 0.0  ;;  %v512_v25 = vmul.f32 0.6931472, %v1454_v54 }
 0x159   :  { %v397_v30 = vrot.slane %v396_v15, 2  ;;  %v389_v33 = vadd.f32 %v388_v17, %v387_v48  ;;  %v476_v36 = vrot.slane %v475_v21, 4  ;;  %v431_v2 = vsel %vm29_vm0, %v429_v24, 0.0 }
 0x15a   :  { %v725_v27 = vmul.f32 %v717_v26, %v1398_v11  ;;  %v760_v28 = vrot.slane %v759_v13, 1  ;;  %v515_v38 = vmul.f32 1.442695, %v512_v25  ;;  %v426_v40 = vmul.f32 0.6931472, %v1425_v55 }
 0x15b   :  { %v1527_v22 = vpop.eup %1153  ;;  %v398_v41 = vadd.f32 %v397_v30, %v396_v15  ;;  %v390_v42 = vrot.slane %v389_v33, 2  ;;  %v432_v44 = vrot.slane %v431_v2, 4  ;;  %v477_v47 = vadd.f32 %v476_v36, %v475_v21 }
 0x15c   :  { %987 = vrot.lane.b32.xlu1 %v1489_v18, %s1221_s18  ;;  %985 = vrot.lane.b32.xlu0 %v725_v27, %s1221_s18  ;;  %v761_v54 = vadd.f32 %v760_v28, %v759_v13  ;;  %v517_v49 = vmul.f32 %v515_v38, %v1369_v12  ;;  %v428_v50 = vmul.f32 1.442695, %v426_v40  ;;  %v556_v51 = vmul.f32 0.6931472, %v1474_v45 }
 0x15d   :  { %v399_v52 = vrot.slane %v398_v41, 1  ;;  %v391_v55 = vadd.f32 %v390_v42, %v389_v33  ;;  %v433_v53 = vadd.f32 %v432_v44, %v431_v2  ;;  %v478_v46 = vrot.slane %v477_v47, 2 }
 0x15e   :  { %v769_v3 = vmul.f32 %v761_v54, %v1398_v11  ;;  %v519_v18 = vsel %vm29_vm0, %v517_v49, 0.0  ;;  %v430_v56 = vmul.f32 %v428_v50, %v1375_v23  ;;  %v559_v16 = vmul.f32 1.442695, %v556_v51 }
 0x15f   :  { %v400_v57 = vadd.f32 %v399_v52, %v398_v41  ;;  %v392_v58 = vrot.slane %v391_v55, 1  ;;  %v434_v59 = vrot.slane %v433_v53, 2  ;;  %v520_v45 = vrot.slane %v519_v18, 4 }
 0x160   :  { %995 = vrot.lane.b32.xlu1 %v770_v20, %s1222_s19  ;;  %993 = vrot.lane.b32.xlu0 %v769_v3, %s1222_s19  ;;  %v479_v60 = vadd.f32 %v478_v46, %v477_v47  ;;  %v438_v61 = vsel %vm29_vm0, %v430_v56, 0.0  ;;  %v561_v62 = vmul.f32 %v559_v16, %v1369_v12  ;;  %v470_v63 = vmul.f32 0.6931472, %v1445_v37 }
 0x161   :  { %v393_v4 = vadd.f32 %v392_v58, %v391_v55  ;;  %v435_v32 = vadd.f32 %v434_v59, %v433_v53  ;;  %v521_v14 = vadd.f32 %v520_v45, %v519_v18  ;;  %v439_v6 = vrot.slane %v438_v61, 4 }
 0x162   :  { %v480_v7 = vrot.slane %v479_v60, 1  ;;  %v563_v0 = vsel %vm29_vm0, %v561_v62, 0.0  ;;  %v472_v48 = vmul.f32 1.442695, %v470_v63  ;;  %v600_v9 = vmul.f32 0.6931472, %v1493_v29 }
 0x163   :  { %v436_v10 = vrot.slane %v435_v32, 1  ;;  %v522_v26 = vrot.slane %v521_v14, 2  ;;  %v440_v13 = vadd.f32 %v439_v6, %v438_v61  ;;  %v564_v15 = vrot.slane %v563_v0, 4 }
 0x164   :  { %819 = vrot.lane.b32.xlu0 %v400_v57, %s1214_s11  ;;  %817 = vrot.lane.b32.xlu1 %v393_v4, %s1214_s11  ;;  %v481_v17 = vadd.f32 %v480_v7, %v479_v60  ;;  %v474_v37 = vmul.f32 %v472_v48, %v1375_v23  ;;  %v603_v20 = vmul.f32 1.442695, %v600_v9  ;;  %v514_v21 = vmul.f32 0.6931472, %v1462_v19 }
 0x165   :  { %v437_v24 = vadd.f32 %v436_v10, %v435_v32  ;;  %v523_v25 = vadd.f32 %v522_v26, %v521_v14  ;;  %v441_v27 = vrot.slane %v440_v13, 2  ;;  %v565_v28 = vadd.f32 %v564_v15, %v563_v0 }
 0x166   :  { %v482_v29 = vsel %vm29_vm0, %v474_v37, 0.0  ;;  %v605_v30 = vmul.f32 %v603_v20, %v1369_v12  ;;  %v516_v33 = vmul.f32 1.442695, %v514_v21  ;;  %v644_v36 = vmul.f32 0.6931472, %v1504_v34 }
 0x167   :  { %v524_v2 = vrot.slane %v523_v25, 1  ;;  %v442_v38 = vadd.f32 %v441_v27, %v440_v13  ;;  %v566_v40 = vrot.slane %v565_v28, 2  ;;  %v483_v54 = vrot.slane %v482_v29, 4 }
 0x168   :  { %833 = vrot.lane.b32.xlu0 %v481_v17, %s1216_s13  ;;  %825 = vrot.lane.b32.xlu1 %v437_v24, %s1215_s12  ;;  %v607_v19 = vsel %vm29_vm0, %v605_v30, 0.0  ;;  %v518_v41 = vmul.f32 %v516_v33, %v1375_v23  ;;  %v647_v42 = vmul.f32 1.442695, %v644_v36  ;;  %v558_v44 = vmul.f32 0.6931472, %v1482_v5 }
 0x169   :  { %v525_v47 = vadd.f32 %v524_v2, %v523_v25  ;;  %v443_v49 = vrot.slane %v442_v38, 1  ;;  %v567_v50 = vadd.f32 %v566_v40, %v565_v28  ;;  %v484_v51 = vadd.f32 %v483_v54, %v482_v29  ;;  %v771_v29 = vld [vmem:[#allocation2 + $0xa0] sm:$0xff] }
 0x16a   :  { %v608_v34 = vrot.slane %v607_v19, 4  ;;  %v526_v3 = vsel %vm29_vm0, %v518_v41, 0.0  ;;  %v649_v52 = vmul.f32 %v647_v42, %v1369_v12  ;;  %v560_v55 = vmul.f32 1.442695, %v558_v44 }
 0x16b   :  { %v444_v53 = vadd.f32 %v443_v49, %v442_v38  ;;  %v568_v46 = vrot.slane %v567_v50, 1  ;;  %v485_v18 = vrot.slane %v484_v51, 2  ;;  %v527_v56 = vrot.slane %v526_v3, 4 }
 0x16c   :  { %841 = vrot.lane.b32.xlu0 %v525_v47, %s1217_s14  ;;  %v609_v16 = vadd.f32 %v608_v34, %v607_v19  ;;  %v651_v57 = vsel %vm29_vm0, %v649_v52, 0.0  ;;  %v562_v5 = vmul.f32 %v560_v55, %v1375_v23  ;;  %v688_v58 = vmul.f32 0.6931472, %v1515_v8 }
 0x16d   :  { %827 = vrot.lane.b32.xlu1 %v444_v53, %s1215_s12  ;;  %v569_v59 = vadd.f32 %v568_v46, %v567_v50  ;;  %v486_v45 = vadd.f32 %v485_v18, %v484_v51  ;;  %v528_v60 = vadd.f32 %v527_v56, %v526_v3  ;;  %v652_v61 = vrot.slane %v651_v57, 4  ;;  %v772_v18 = vld [vmem:[#allocation2 + $0xa8] sm:$0xff] }
 0x16e   :  { %v610_v62 = vrot.slane %v609_v16, 2  ;;  %v570_v63 = vsel %vm29_vm0, %v562_v5, 0.0  ;;  %v691_v4 = vmul.f32 1.442695, %v688_v58  ;;  %v602_v32 = vmul.f32 0.6931472, %v1417_v39 }
 0x16f   :  { %v487_v14 = vrot.slane %v486_v45, 1  ;;  %v529_v6 = vrot.slane %v528_v60, 2  ;;  %v653_v7 = vadd.f32 %v652_v61, %v651_v57  ;;  %v571_v0 = vrot.slane %v570_v63, 4 }
 0x170   :  { %849 = vrot.lane.b32.xlu0 %v569_v59, %s1218_s15  ;;  %v611_v48 = vadd.f32 %v610_v62, %v609_v16  ;;  %v693_v8 = vmul.f32 %v691_v4, %v1369_v12  ;;  %v604_v9 = vmul.f32 1.442695, %v602_v32  ;;  %v732_v10 = vmul.f32 0.6931472, %v1527_v22 }
 0x171   :  { %v488_v26 = vadd.f32 %v487_v14, %v486_v45  ;;  %v530_v13 = vadd.f32 %v529_v6, %v528_v60  ;;  %v654_v15 = vrot.slane %v653_v7, 2  ;;  %v572_v17 = vadd.f32 %v571_v0, %v570_v63 }
 0x172   :  { %v612_v37 = vrot.slane %v611_v48, 1  ;;  %v695_v20 = vsel %vm29_vm0, %v693_v8, 0.0  ;;  %v606_v39 = vmul.f32 %v604_v9, %v1375_v23  ;;  %v735_v21 = vmul.f32 1.442695, %v732_v10 }
 0x173   :  { %835 = vrot.lane.b32.xlu1 %v488_v26, %s1216_s13  ;;  %v531_v24 = vrot.slane %v530_v13, 1  ;;  %v655_v25 = vadd.f32 %v654_v15, %v653_v7  ;;  %v573_v27 = vrot.slane %v572_v17, 2  ;;  %v696_v28 = vrot.slane %v695_v20, 4 }
 0x174   :  { %v613_v30 = vadd.f32 %v612_v37, %v611_v48  ;;  %v614_v22 = vsel %vm29_vm0, %v606_v39, 0.0  ;;  %v737_v33 = vmul.f32 %v735_v21, %v1369_v12  ;;  %v646_v36 = vmul.f32 0.6931472, %v1432_v1 }
 0x175   :  { %v532_v2 = vadd.f32 %v531_v24, %v530_v13  ;;  %v656_v38 = vrot.slane %v655_v25, 1  ;;  %v574_v40 = vadd.f32 %v573_v27, %v572_v17  ;;  %v697_v54 = vadd.f32 %v696_v28, %v695_v20 }
 0x176   :  { %857 = vrot.lane.b32.xlu0 %v613_v30, %s1219_s16  ;;  %v615_v19 = vrot.slane %v614_v22, 4  ;;  %v739_v41 = vsel %vm29_vm0, %v737_v33, 0.0  ;;  %v648_v42 = vmul.f32 1.442695, %v646_v36  ;;  %v773_v44 = vmax.f32 %v771_v29, 1e-10 }
 0x177   :  { %843 = vrot.lane.b32.xlu1 %v532_v2, %s1217_s14  ;;  %v657_v47 = vadd.f32 %v656_v38, %v655_v25  ;;  %v575_v49 = vrot.slane %v574_v40, 1  ;;  %v698_v50 = vrot.slane %v697_v54, 2  ;;  %v740_v51 = vrot.slane %v739_v41, 4  ;;  %v1596_v2 = vld [vmem:[#allocation2 + $0x8] sm:$0xff] }
 0x178   :  { %v616_v34 = vadd.f32 %v615_v19, %v614_v22  ;;  %v650_v1 = vmul.f32 %v648_v42, %v1375_v23  ;;  %1155 = vlog2.f32 %v773_v44  ;;  %v690_v3 = vmul.f32 0.6931472, %v1470_v31 }
 0x179   :  { %v576_v52 = vadd.f32 %v575_v49, %v574_v40  ;;  %v699_v55 = vadd.f32 %v698_v50, %v697_v54  ;;  %v741_v53 = vadd.f32 %v740_v51, %v739_v41  ;;  %v797_v46 = vmul.f32 %v771_v29, %v1369_v12 }
 0x17a   :  { %865 = vrot.lane.b32.xlu0 %v657_v47, %s1220_s17  ;;  %v617_v56 = vrot.slane %v616_v34, 2  ;;  %v658_v16 = vsel %vm29_vm0, %v650_v1, 0.0  ;;  %v692_v57 = vmul.f32 1.442695, %v690_v3  ;;  %v734_v5 = vmul.f32 0.6931472, %v1500_v43 }
 0x17b   :  { %851 = vrot.lane.b32.xlu1 %v576_v52, %s1218_s15  ;;  %v700_v58 = vrot.slane %v699_v55, 1  ;;  %v742_v59 = vrot.slane %v741_v53, 2  ;;  %v659_v45 = vrot.slane %v658_v16, 4  ;;  %v799_v61 = vsel %vm29_vm0, %v797_v46, 0.0 }
 0x17c   :  { %v618_v31 = vadd.f32 %v617_v56, %v616_v34  ;;  %v694_v60 = vmul.f32 %v692_v57, %v1375_v23  ;;  %v736_v62 = vmul.f32 1.442695, %v734_v5  ;;  %v774_v14 = vmax.f32 %v772_v18, 1e-10 }
 0x17d   :  { %v701_v63 = vadd.f32 %v700_v58, %v699_v55  ;;  %v743_v4 = vadd.f32 %v742_v59, %v741_v53  ;;  %v660_v32 = vadd.f32 %v659_v45, %v658_v16  ;;  %v800_v10 = vrot.slane %v799_v61, 4 }
 0x17e   :  { %v619_v6 = vrot.slane %v618_v31, 1  ;;  %v702_v7 = vsel %vm29_vm0, %v694_v60, 0.0  ;;  %v738_v43 = vmul.f32 %v736_v62, %v1375_v23  ;;  %1157 = vlog2.f32 %v774_v14 }
 0x17f   :  { %873 = vrot.lane.b32.xlu0 %v701_v63, %s1221_s18  ;;  %v744_v0 = vrot.slane %v743_v4, 1  ;;  %v661_v48 = vrot.slane %v660_v32, 2  ;;  %v703_v8 = vrot.slane %v702_v7, 4  ;;  %v798_v13 = vmul.f32 %v772_v18, %v1375_v23 }
 0x180   :  { %v620_v9 = vadd.f32 %v619_v6, %v618_v31  ;;  %v746_v26 = vsel %vm29_vm0, %v738_v43, 0.0  ;;  %v801_v28 = vadd.f32 %v800_v10, %v799_v61  ;;  %v358_v42 = vmul.f32 %v1596_v2, %v1375_v23 }
 0x181   :  { %v745_v15 = vadd.f32 %v744_v0, %v743_v4  ;;  %v662_v17 = vadd.f32 %v661_v48, %v660_v32  ;;  %v704_v37 = vadd.f32 %v703_v8, %v702_v7  ;;  %v747_v20 = vrot.slane %v746_v26, 4 }
 0x182   :  { %v1156_v39 = vpop.eup %1155  ;;  %859 = vrot.lane.b32.xlu1 %v620_v9, %s1219_s16  ;;  %v806_v29 = vsel %vm29_vm0, %v798_v13, 0.0  ;;  %v802_v41 = vrot.slane %v801_v28, 2  ;;  %v366_v53 = vsel %vm29_vm0, %v358_v42, 0.0  ;;  %v333_v42 = vmax.f32 %v1596_v2, 1e-10 }
 0x183   :  { %881 = vrot.lane.b32.xlu0 %v745_v15, %s1222_s19  ;;  %v663_v21 = vrot.slane %v662_v17, 1  ;;  %v776_v24 = vmul.f32 0.6931472, %v1156_v39  ;;  %v705_v25 = vrot.slane %v704_v37, 2  ;;  %v748_v27 = vadd.f32 %v747_v20, %v746_v26 }
 0x184   :  { %v807_v19 = vrot.slane %v806_v29, 4  ;;  %v803_v52 = vadd.f32 %v802_v41, %v801_v28  ;;  %v367_v57 = vrot.slane %v366_v53, 4 }
 0x185   :  { %v664_v30 = vadd.f32 %v663_v21, %v662_v17  ;;  %v779_v22 = vmul.f32 1.442695, %v776_v24  ;;  %v706_v33 = vadd.f32 %v705_v25, %v704_v37  ;;  %v749_v36 = vrot.slane %v748_v27, 2 }
 0x186   :  { %v808_v1 = vadd.f32 %v807_v19, %v806_v29  ;;  %v804_v58 = vrot.slane %v803_v52, 1  ;;  %v368_v62 = vadd.f32 %v367_v57, %v366_v53 }
 0x187   :  { %867 = vrot.lane.b32.xlu1 %v664_v30, %s1220_s17  ;;  %v781_v38 = vmul.f32 %v779_v22, %v1369_v12  ;;  %v707_v40 = vrot.slane %v706_v33, 1  ;;  %v750_v54 = vadd.f32 %v749_v36, %v748_v27  ;;  %v330_v22 = vld [vmem:[#allocation2] sm:$0xff] }
 0x188   :  { %v1158_v44 = vpop.eup %1157  ;;  %v809_v16 = vrot.slane %v808_v1, 2  ;;  %v805_v4 = vadd.f32 %v804_v58, %v803_v52  ;;  %v369_v7 = vrot.slane %v368_v62, 2  ;;  %v357_v2 = vmul.f32 %v330_v22, %v1369_v12 }
 0x189   :  { %v783_v47 = vsel %vm29_vm0, %v781_v38, 0.0  ;;  %v708_v49 = vadd.f32 %v707_v40, %v706_v33  ;;  %v751_v50 = vrot.slane %v750_v54, 1  ;;  %v778_v34 = vmul.f32 0.6931472, %v1158_v44 }
 0x18a   :  { %v784_v51 = vrot.slane %v783_v47, 4  ;;  %v810_v61 = vadd.f32 %v809_v16, %v808_v1  ;;  %v813_v43 = vmul.f32 %v805_v4, %v1398_v11  ;;  %v370_v9 = vadd.f32 %v369_v7, %v368_v62 }
 0x18b   :  { %875 = vrot.lane.b32.xlu1 %v708_v49, %s1221_s18  ;;  %v780_v55 = vmul.f32 1.442695, %v778_v34  ;;  %v752_v46 = vadd.f32 %v751_v50, %v750_v54  ;;  %v332_v38 = vmax.f32 %v330_v22, 1e-10  ;;  %v359_v58 = vsel %vm29_vm0, %v357_v2, 0.0 }
 0x18c   :  { %v785_v3 = vadd.f32 %v784_v51, %v783_v47  ;;  %v811_v6 = vrot.slane %v810_v61, 1  ;;  %v371_v26 = vrot.slane %v370_v9, 1 }
 0x18d   :  { %v782_v56 = vmul.f32 %v780_v55, %v1375_v23  ;;  %1159 = vlog2.f32 %v332_v38  ;;  %v1163_v38 = vld [vmem:[%s1748_s3] sm:$0x1]  ;;  %s1224_s3 = smov [#allocation4]  }
 0x18e   :  { %v786_v18 = vrot.slane %v785_v3, 2  ;;  %v812_v8 = vadd.f32 %v811_v6, %v810_v61  ;;  %v372_v13 = vadd.f32 %v371_v26, %v370_v9  ;;  %1161 = vlog2.f32 %v333_v42  ;;  %s1034_s23 = sshll.u32 %s1224_s3, 4  ;;  %s1035_s23 = int_to_ptr.vmem [resolvable:$true] %s1034_s23 }
 0x18f   :  { %883 = vrot.lane.b32.xlu1 %v752_v46, %s1222_s19  ;;  %v790_v59 = vsel %vm29_vm0, %v782_v56, 0.0  ;;  %s1164_s26 = scalar_lea.vmem %s1035_s23, 32  ;;  %p1169_p1 = scmp.lt.s32.totalorder %s1035_s23, %s1035_s23 }
 0x190   :  { %v787_v5 = vadd.f32 %v786_v18, %v785_v3  ;;  %v791_v45 = vrot.slane %v790_v59, 4  ;;  %v814_v10 = vmul.f32 %v812_v8, %v1414_v35  ;;  %v374_v17 = vmul.f32 %v372_v13, %v1414_v35  ;;  %p1165_p0 = scmp.ne.s32.totalorder %s1035_s23, %s1164_s26  ;;  %p1170_p2 = scmp.lt.s32.totalorder %s1164_s26, %s1164_s26 }
 0x192   :  { %v788_v31 = vrot.slane %v787_v5, 1  ;;  %v792_v60 = vadd.f32 %v791_v45, %v790_v59  ;;  %v360_v45 = vrot.slane %v359_v58, 4  ;;  %p1171_p3 = por %p1170_p2, %p1169_p1 }
 0x194   :  { %v789_v63 = vadd.f32 %v788_v31, %v787_v5  ;;  %v793_v32 = vrot.slane %v792_v60, 2  ;;  %p1172_p4 = pnand %p1171_p3, %p1165_p0 }
 0x196   :  { %889 = vrot.lane.b32.xlu0 %v789_v63, %s1223_s20  ;;  %v794_v14 = vadd.f32 %v793_v32, %v792_v60  ;;  %v361_v63 = vadd.f32 %v360_v45, %v359_v58 }
 0x197   :  { %v1160_v50 = vpop.eup %1159 }
 0x198   :  { %v795_v0 = vrot.slane %v794_v14, 1  ;;  %v335_v34 = vmul.f32 0.6931472, %v1160_v50  ;;  %v1162_v55 = vpop.eup %1161  ;;  %v362_v7 = vrot.slane %v361_v63, 2 }
 0x199   :  { %v337_v18 = vmul.f32 0.6931472, %v1162_v55 }
 0x19a   :  { %1001 = vrot.lane.b32.xlu0 %v813_v43, %s1223_s20  ;;  %v796_v48 = vadd.f32 %v795_v0, %v794_v14  ;;  %v339_v3 = vmul.f32 1.442695, %v335_v34 }
 0x19b   :  { %v340_v5 = vmul.f32 1.442695, %v337_v18 }
 0x19c   :  { %891 = vrot.lane.b32.xlu1 %v796_v48, %s1223_s20  ;;  %v341_v46 = vmul.f32 %v339_v3, %v1369_v12  ;;  %v363_v48 = vadd.f32 %v362_v7, %v361_v63 }
 0x19d   :  { %v342_v31 = vmul.f32 %v340_v5, %v1375_v23 }
 0x19e   :  { %v343_v16 = vsel %vm29_vm0, %v341_v46, 0.0  ;;  %v364_v13 = vrot.slane %v363_v48, 1 }
 0x19f   :  { %v344_v59 = vrot.slane %v343_v16, 4  ;;  %v350_v4 = vsel %vm29_vm0, %v342_v31, 0.0 }
 0x1a0   :  { %1003 = vrot.lane.b32.xlu1 %v814_v10, %s1223_s20  ;;  %v351_v12 = vrot.slane %v350_v4, 4 }
 0x1a1   :  { %v1613_v39 = vpop.permute.xlu0 %929  ;;  %v345_v62 = vadd.f32 %v344_v59, %v343_v16 }
 0x1a2   :  { %v352_v0 = vadd.f32 %v351_v12, %v350_v4 }
 0x1a3   :  { %v346_v32 = vrot.slane %v345_v62, 2 }
 0x1a4   :  { %v353_v26 = vrot.slane %v352_v0, 2 }
 0x1a5   :  { %v932_v15 = vpop.permute.xlu1 %931  ;;  %v1618_v25 = vpop.permute.xlu0 %937  ;;  %v347_v43 = vadd.f32 %v346_v32, %v345_v62 }
 0x1a6   :  { %v1008_v37 = vsel %vm29_vm0, %v374_v17, %v932_v15  ;;  %v354_v17 = vadd.f32 %v353_v26, %v352_v0 }
 0x1a7   :  { %v348_v10 = vrot.slane %v347_v43, 1 }
 0x1a8   :  { %v355_v22 = vrot.slane %v354_v17, 1 }
 0x1a9   :  { %v349_v23 = vadd.f32 %v348_v10, %v347_v43 }
 0x1aa   :  { %v940_v20 = vpop.permute.xlu1 %939  ;;  %v356_v18 = vadd.f32 %v355_v22, %v354_v17 }
 0x1ab   :  { %v1010_v11 = vsel %vm897_vm1, %v1008_v37, %v940_v20  ;;  %v365_v20 = vadd.f32 %v364_v13, %v363_v48 }
 0x1ad   :  { %v373_v42 = vmul.f32 %v1163_v38, %v365_v20 }
 0x1ae   :  { %v1620_v27 = vpop.permute.xlu0 %945 }
 0x1af   :  { %v1007_v46 = vsel %vm29_vm0, %v373_v42, %v1613_v39 }
 0x1b2   :  { %v948_v21 = vpop.permute.xlu1 %947 }
 0x1b3   :  { %v1616_v24 = vsel %vm900_vm2, %v1010_v11, %v948_v21 }
 0x1b6   :  { %v1622_v28 = vpop.permute.xlu0 %953 }
 0x1ba   :  { %v1624_v35 = vpop.permute.xlu1 %955 }
 0x1be   :  { %v1626_v29 = vpop.permute.xlu0 %961 }
 0x1c2   :  { %v1628_v30 = vpop.permute.xlu1 %963 }
 0x1c6   :  { %v1630_v33 = vpop.permute.xlu1 %971  ;;  %v1632_v36 = vpop.permute.xlu0 %969 }
 0x1ca   :  { %v1634_v40 = vpop.permute.xlu1 %979  ;;  %v1636_v54 = vpop.permute.xlu0 %977 }
 0x1ce   :  { %v1638_v19 = vpop.permute.xlu1 %987  ;;  %v1640_v41 = vpop.permute.xlu0 %985 }
 0x1d2   :  { %v1643_v44 = vpop.permute.xlu1 %995  ;;  %v1645_v47 = vpop.permute.xlu0 %993 }
 0x1d6   :  { %v818_v49 = vpop.permute.xlu1 %817  ;;  %v1647_v51 = vpop.permute.xlu0 %819 }
 0x1d7   :  { %v895_v11 = vsel %vm29_vm0, %v349_v23, %v818_v49  ;;  %v896_v16 = vsel %vm29_vm0, %v356_v18, %v1647_v51 }
 0x1da   :  { %v826_v1 = vpop.permute.xlu1 %825  ;;  %v834_v52 = vpop.permute.xlu0 %833 }
 0x1db   :  { %v898_v21 = vsel %vm897_vm1, %v895_v11, %v826_v1  ;;  %v1009_v1 = vsel %vm897_vm1, %v1007_v46, %v1618_v25 }
 0x1dc   :  { %v901_v50 = vsel %vm900_vm2, %v898_v21, %v834_v52  ;;  %v1011_v52 = vsel %vm900_vm2, %v1009_v1, %v1620_v27 }
 0x1dd   :  { %v1013_v39 = vsel %vm903_vm3, %v1011_v52, %v1622_v28 }
 0x1de   :  { %v842_v56 = vpop.permute.xlu0 %841  ;;  %v1015_v25 = vsel %vm906_vm4, %v1013_v39, %v1626_v29 }
 0x1df   :  { %v1649_v53 = vpop.permute.xlu1 %827  ;;  %v904_v3 = vsel %vm903_vm3, %v901_v50, %v842_v56  ;;  %v1017_v45 = vsel %vm909_vm5, %v1015_v25, %v1632_v36 }
 0x1e0   :  { %v899_v58 = vsel %vm897_vm1, %v896_v16, %v1649_v53 }
 0x1e2   :  { %v850_v60 = vpop.permute.xlu0 %849 }
 0x1e3   :  { %v907_v49 = vsel %vm906_vm4, %v904_v3, %v850_v60  ;;  %v1019_v60 = vsel %vm912_vm6, %v1017_v45, %v1636_v54 }
 0x1e4   :  { %v1021_v29 = vsel %vm915_vm7, %v1019_v60, %v1640_v41 }
 0x1e5   :  { %v836_v57 = vpop.permute.xlu1 %835  ;;  %v1023_v36 = vsel %vm918_vm8, %v1021_v29, %v1645_v47 }
 0x1e6   :  { %v902_v28 = vsel %vm900_vm2, %v899_v58, %v836_v57 }
 0x1e8   :  { %v858_v14 = vpop.permute.xlu0 %857 }
 0x1e9   :  { %v844_v61 = vpop.permute.xlu1 %843  ;;  %v910_v2 = vsel %vm909_vm5, %v907_v49, %v858_v14 }
 0x1ea   :  { %v905_v62 = vsel %vm903_vm3, %v902_v28, %v844_v61  ;;  %v1014_v61 = vsel %vm903_vm3, %v1616_v24, %v1624_v35 }
 0x1eb   :  { %v1016_v47 = vsel %vm906_vm4, %v1014_v61, %v1628_v30 }
 0x1ec   :  { %v866_v8 = vpop.permute.xlu0 %865  ;;  %v1018_v12 = vsel %vm909_vm5, %v1016_v47, %v1630_v33 }
 0x1ed   :  { %v852_v6 = vpop.permute.xlu1 %851  ;;  %v913_v56 = vsel %vm912_vm6, %v910_v2, %v866_v8  ;;  %v1020_v24 = vsel %vm912_vm6, %v1018_v12, %v1634_v40 }
 0x1ee   :  { %v908_v53 = vsel %vm906_vm4, %v905_v62, %v852_v6  ;;  %v1022_v35 = vsel %vm915_vm7, %v1020_v24, %v1638_v19 }
 0x1f1   :  { %v874_v15 = vpop.permute.xlu0 %873 }
 0x1f2   :  { %v916_v5 = vsel %vm915_vm7, %v913_v56, %v874_v15 }
 0x1f4   :  { %v860_v9 = vpop.permute.xlu1 %859 }
 0x1f5   :  { %v882_v34 = vpop.permute.xlu0 %881  ;;  %v911_v57 = vsel %vm909_vm5, %v908_v53, %v860_v9 }
 0x1f6   :  { %v919_v27 = vsel %vm918_vm8, %v916_v5, %v882_v34 }
 0x1f9   :  { %v868_v37 = vpop.permute.xlu1 %867 }
 0x1fa   :  { %v914_v4 = vsel %vm912_vm6, %v911_v57, %v868_v37 }
 0x1fd   :  { %v876_v55 = vpop.permute.xlu1 %875 }
 0x1fe   :  { %v917_v41 = vsel %vm915_vm7, %v914_v4, %v876_v55 }
 0x201   :  { %v884_v51 = vpop.permute.xlu1 %883 }
 0x202   :  { %v920_v32 = vsel %vm918_vm8, %v917_v41, %v884_v51 }
 0x208   :  { %v890_v59 = vpop.permute.xlu0 %889 }
 0x209   :  { %v922_v31 = vsel %vm921_vm9, %v919_v27, %v890_v59 }
 0x20a   :  { %925 = vst.msk [vmem:[#allocation4] sm:$0x1] %vm924_vm10, %v922_v31 }
 0x20c   :  { %v1002_v63 = vpop.permute.xlu0 %1001 }
 0x20d   :  { %v1025_v54 = vsel %vm921_vm9, %v1023_v36, %v1002_v63 }
 0x20e   :  { %1027 = vst.msk [vmem:[#allocation6] sm:$0x1] %vm924_vm10, %v1025_v54  ;;  %v892_v14 = vpop.permute.xlu1 %891 }
 0x20f   :  { %v923_v6 = vsel %vm921_vm9, %v920_v32, %v892_v14 }
 0x210   :  { %926 = vst.msk [vmem:[#allocation4 + $0x1] sm:$0x1] %vm924_vm10, %v923_v6 }
 0x211   :  { %1175 = shalt.err (!%p1172_p4)
}
 0x212   :  { %s1176_s0 = scalar_lea.hbm %s1750_s5, 32 }
 0x213   :  { %p1177_p5 = scmp.ne.s32.totalorder %s1750_s5, %s1176_s0  ;;  %p1180_p6 = scmp.lt.u32.totalorder %s1176_s0, %s1750_s5 }
 0x215   :  { %p1182_p7 = pnand %p1180_p6, %p1177_p5 }
 0x217   :  { %1185 = shalt.err (!%p1182_p7)
}
 0x218   :  { %s1226_s7 = smov 16   ;;  %v1024_v30 = vsel %vm918_vm8, %v1022_v35, %v1643_v44  ;;  %v1004_v33 = vpop.permute.xlu1 %1003  ;;  %s1186_s9 = scalar_lea.vmem %s1047_s25, 32 }
 0x219   :  { %1040 = dma.vmem_to_hbm [thread:$0]  %s1035_s23, 32, %s1750_s5, [#allocation5], %s1226_s7, %s1226_s7, %s1214_s11   ;;  %v1026_v40 = vsel %vm921_vm9, %v1024_v30, %v1004_v33 }
 0x21a   :  { %1028 = vst.msk [vmem:[#allocation6 + $0x1] sm:$0x1] %vm924_vm10, %v1026_v40  ;;  %p1187_p8 = scmp.ne.s32.totalorder %s1047_s25, %s1186_s9  ;;  %p1191_p9 = scmp.lt.s32.totalorder %s1047_s25, %s1047_s25 }
 0x21b   :  { %p1192_p10 = scmp.lt.s32.totalorder %s1186_s9, %s1186_s9 }
 0x21d   :  { %p1193_p11 = por %p1192_p10, %p1191_p9 }
 0x21f   :  { %p1194_p12 = pnand %p1193_p11, %p1187_p8 }
 0x221   :  { %1197 = shalt.err (!%p1194_p12)
}
 0x222   :  { %s1198_s5 = scalar_lea.hbm %s1751_s6, 32 }
 0x223   :  { %p1199_p13 = scmp.ne.s32.totalorder %s1751_s6, %s1198_s5  ;;  %p1202_p0 = scmp.lt.u32.totalorder %s1198_s5, %s1751_s6 }
 0x225   :  { %p1204_p1 = pnand %p1202_p0, %p1199_p13 }
 0x227   :  { %1207 = shalt.err (!%p1204_p1)
}
 0x228   :  { %1052 = dma.vmem_to_hbm [thread:$0]  %s1047_s25, 32, %s1751_s6, [#allocation7], %s1226_s7, %s1226_s7, %s1214_s11  }
 0x229   :  { %1208 = dma.done.wait [#allocation5], 32  }
 0x22a   :  { %1209 = vsyncadd [#allocation5], 4294967264 }
 0x22b   :  { %1210 = dma.done.wait [#allocation7], 32  }
 0x22c   :  { %1211 = vsyncadd [#allocation7], 4294967264 }
 0x22d   :  { %1059 = vsyncpa [#allocation5], 1 }
 0x22e   :  { %1060 = vsyncpa [#allocation7], 1 }

</bundles_post_ra>
